<compile_context>
chip_gen: v5e
topology: v5e:2x2
jax: 0.10.0
libtpu: 0.0.40
codegen_flags: <defaults>
</compile_context>

<pallas_src>
import math

import jax
import jax.numpy as jnp
from jax.experimental import pallas as pl
from jax.experimental.pallas import tpu as pltpu

NEG_SLOPE = 0.01  # default negative_slope of nn.LeakyReLU / F.leaky_relu


def _leaky(v):
    return jnp.where(v >= 0, v, NEG_SLOPE * v)


# ---------------------------------------------------------------------------
# Fused kernel
# ---------------------------------------------------------------------------
def _make_decode_kernel(H, W, Cin, Cout, K, B_TILE, has_convx):
    HW = H * W
    NL = B_TILE * HW
    pad = (K - 1) // 2
    taps = [(kh - pad, kw - pad) for kh in range(K) for kw in range(K)]

    def mm(a, b):
        return jax.lax.dot_general(
            a, b, dimension_numbers=(((1,), (0,)), ((), ())),
            preferred_element_type=jnp.float32)

    def kernel(*args):
        if has_convx:
            (x_ref, skip_ref, mt_ref, mask_ref, w1u_ref, w1s_ref, b1_ref,
             w2_ref, b2_ref, wx_ref, bx_ref, o_ref) = args
        else:
            (x_ref, skip_ref, mt_ref, mask_ref, w1u_ref, w1s_ref, b1_ref,
             w2_ref, b2_ref, o_ref) = args

        mt = mt_ref[...]                       # (hw, HW) interp matrix
        masks = mask_ref[...]                  # (K*K, NL) 0/1 tap validity
        mask_rows = [masks[t:t + 1, :] for t in range(len(taps))]

        # 1) Bilinear upsample: one MXU matmul per image with the precomputed
        #    interp matrix.  The 1x1 shortcut is folded in by stacking Wx@x
        #    (at LOW resolution) on top of x, so the same matmul also yields
        #    the shortcut rows.  Results are lane-concatenated -> (C, NL).
        ups, scs = [], []
        for b in range(B_TILE):
            xb = x_ref[b]                                        # (Cin, hw)
            if has_convx:
                stacked = jnp.concatenate([xb, mm(wx_ref[...], xb)], axis=0)
                upsc = mm(stacked, mt)                           # (Cin+Cout, HW)
                ups.append(upsc[:Cin])
                scs.append(upsc[Cin:])
            else:
                ups.append(mm(xb, mt))
        up = ups[0] if B_TILE == 1 else jnp.concatenate(ups, axis=1)  # (Cin, NL)
        skip = skip_ref[...]                                          # (Cout, NL)
        if has_convx:
            sc = scs[0] if B_TILE == 1 else jnp.concatenate(scs, axis=1)
            sc = sc + bx_ref[...]
        else:
            sc = up

        # 2) KxK "same" conv as per-tap matmuls accumulated in registers.
        #    Boundary mask is applied to the (Cout, NL) tap output, which is
        #    equivalent to masking the input (mask acts per lane/position).
        def conv_kxk(acts_and_weights, bias):
            acc = None
            for t, (dh, dw) in enumerate(taps):
                shift = dh * W + dw
                tap = None
                for act, w_ref in acts_and_weights:
                    src = act if shift == 0 else pltpu.roll(
                        act, shift=(-shift) % NL, axis=1)
                    contrib = mm(w_ref[t], src)                  # (Cout, NL)
                    tap = contrib if tap is None else tap + contrib
                if (dh, dw) != (0, 0):
                    tap = tap * mask_rows[t]
                acc = tap if acc is None else acc + tap
            return acc + bias

        c1 = _leaky(conv_kxk([(up, w1u_ref), (skip, w1s_ref)], b1_ref[...]))
        c2 = _leaky(conv_kxk([(c1, w2_ref)], b2_ref[...]))

        # 3) residual add + final LeakyReLU; lane-dense (Cout, NL) store.
        o_ref[...] = _leaky(c2 + sc).astype(o_ref.dtype)

    return kernel


# ---------------------------------------------------------------------------
# Host-side helpers
# ---------------------------------------------------------------------------
def _interp_matrix(out_size, in_size):
    """1-D bilinear interpolation matrix (PyTorch align_corners=False)."""
    d = (jnp.arange(out_size, dtype=jnp.float32) + 0.5) * (in_size / out_size) - 0.5
    d = jnp.clip(d, 0.0, in_size - 1)
    i0 = jnp.floor(d).astype(jnp.int32)
    i1 = jnp.minimum(i0 + 1, in_size - 1)
    f = d - i0.astype(jnp.float32)
    rows = jnp.arange(out_size)
    m = jnp.zeros((out_size, in_size), jnp.float32)
    m = m.at[rows, i0].add(1.0 - f)
    m = m.at[rows, i1].add(f)
    return m


def _pick_batch_tile(N, max_tile=8):
    """Largest tile dividing N while keeping >= 2 grid steps (v7x: 2 TCs)."""
    for bt in range(min(max_tile, N), 0, -1):
        if N % bt == 0 and N // bt >= 2:
            return bt
    return 1


def decode_res_block_forward(params, x, skip_x, batch_tile=None):
    """DecodeResBlock2D.forward(x, skip_x); both inputs NCHW float32."""
    N, Cin, h, w = x.shape
    Ns, Cout, H, W = skip_x.shape
    assert Ns == N
    hw, HW = h * w, H * W
    K = params["w1"].shape[2]
    KK = K * K
    pad = (K - 1) // 2
    has_convx = "wx" in params
    B_TILE = batch_tile if batch_tile is not None else _pick_batch_tile(N)
    assert N % B_TILE == 0
    NL = B_TILE * HW

    # (hw, HW) bilinear interp matrix = kron of 1-D H and W matrices.
    mt = jnp.kron(_interp_matrix(H, h), _interp_matrix(W, w)).T

    # Per-tap boundary masks, hoisted out of the kernel, tiled over B_TILE.
    taps = [(kh - pad, kw - pad) for kh in range(K) for kw in range(K)]
    pos = jnp.arange(HW, dtype=jnp.int32)
    row, col = pos // W, pos % W
    mask = jnp.stack([
        jnp.tile(((row + dh >= 0) & (row + dh < H) &
                  (col + dw >= 0) & (col + dw < W)).astype(jnp.float32), B_TILE)
        for dh, dw in taps], axis=0)                                # (KK, NL)

    # Per-tap weight slices; conv1 input order is cat([up, skip], 1).
    w1_taps = jnp.transpose(params["w1"], (2, 3, 0, 1)).reshape(KK, Cout, Cin + Cout)
    w1u, w1s = w1_taps[:, :, :Cin], w1_taps[:, :, Cin:]
    w2_taps = jnp.transpose(params["w2"], (2, 3, 0, 1)).reshape(KK, Cout, Cout)
    b1 = params["b1"].reshape(Cout, 1)
    b2 = params["b2"].reshape(Cout, 1)

    # Layout plumbing (outside the kernel): x keeps its leading batch dim at
    # low res; skip / out are lane-concatenated (C, N*HW) so the kernel's
    # matmul N dim is B_TILE*HW and stores are unmasked and lane-dense.
    x_flat = x.reshape(N, Cin, hw)
    skip_lane = skip_x.reshape(N, Cout, HW).transpose(1, 0, 2).reshape(Cout, N * HW)

    def const(shape):
        return pl.BlockSpec(shape, lambda g: (0,) * len(shape))

    operands = [x_flat, skip_lane, mt, mask, w1u, w1s, b1, w2_taps, b2]
    in_specs = [
        pl.BlockSpec((B_TILE, Cin, hw), lambda g: (g, 0, 0)),
        pl.BlockSpec((Cout, NL), lambda g: (0, g)),
        const((hw, HW)),
        const((KK, NL)),
        const((KK, Cout, Cin)),
        const((KK, Cout, Cout)),
        const((Cout, 1)),
        const((KK, Cout, Cout)),
        const((Cout, 1)),
    ]
    if has_convx:
        operands += [params["wx"].reshape(Cout, Cin),
                     params["bx"].reshape(Cout, 1)]
        in_specs += [const((Cout, Cin)), const((Cout, 1))]

    kernel = _make_decode_kernel(H, W, Cin, Cout, K, B_TILE, has_convx)
    out_lane = pl.pallas_call(
        kernel,
        out_shape=jax.ShapeDtypeStruct((Cout, N * HW), x.dtype),
        grid=(N // B_TILE,),
        in_specs=in_specs,
        out_specs=pl.BlockSpec((Cout, NL), lambda g: (0, g)),
        compiler_params=pltpu.CompilerParams(
            dimension_semantics=("parallel",)),
    )(*operands)
    return out_lane.reshape(Cout, N, HW).transpose(1, 0, 2).reshape(N, Cout, H, W)


# ---------------------------------------------------------------------------
# Parameter init (PyTorch Conv2d default uniform init, OIHW layout)
# ---------------------------------------------------------------------------
def init_params(key, in_chl, out_chl, kernel_size=3):
    def conv_init(k, cout, cin, ksz):
        kw_, kb_ = jax.random.split(k)
        bound = 1.0 / math.sqrt(cin * ksz * ksz)
        wgt = jax.random.uniform(kw_, (cout, cin, ksz, ksz), jnp.float32,
                                 -bound, bound)
        bia = jax.random.uniform(kb_, (cout,), jnp.float32, -bound, bound)
        return wgt, bia

    k1, k2, k3 = jax.random.split(key, 3)
    p = {}
    p["w1"], p["b1"] = conv_init(k1, out_chl, in_chl + out_chl, kernel_size)
    p["w2"], p["b2"] = conv_init(k2, out_chl, out_chl, kernel_size)
    if in_chl != out_chl:
        p["wx"], p["bx"] = conv_init(k3, out_chl, in_chl, 1)
    return p


# ---------------------------------------------------------------------------
# Pure-JAX reference (gather-based bilinear + lax.conv) for validation
# ---------------------------------------------------------------------------
def reference_forward(params, x, skip_x):
    N, Cin, h, w = x.shape
    _, Cout, H, W = skip_x.shape
    K = params["w1"].shape[2]

    def coords(o, i):
        d = (jnp.arange(o, dtype=jnp.float32) + 0.5) * (i / o) - 0.5
        d = jnp.clip(d, 0.0, i - 1)
        i0 = jnp.floor(d).astype(jnp.int32)
        i1 = jnp.minimum(i0 + 1, i - 1)
        return i0, i1, d - i0.astype(jnp.float32)

    h0, h1, fh = coords(H, h)
    w0, w1, fw = coords(W, w)
    top, bot = x[:, :, h0, :], x[:, :, h1, :]
    rows = top * (1.0 - fh)[None, None, :, None] + bot * fh[None, None, :, None]
    left, right = rows[:, :, :, w0], rows[:, :, :, w1]
    up = left * (1.0 - fw) + right * fw

    def conv(inp, wgt, bia, pad):
        out = jax.lax.conv_general_dilated(
            inp, wgt, window_strides=(1, 1), padding=[(pad, pad), (pad, pad)],
            dimension_numbers=("NCHW", "OIHW", "NCHW"),
            precision=jax.lax.Precision.HIGHEST)
        return out + bia[None, :, None, None]

    c = _leaky(conv(jnp.concatenate([up, skip_x], axis=1),
                    params["w1"], params["b1"], (K - 1) // 2))
    c = _leaky(conv(c, params["w2"], params["b2"], (K - 1) // 2))
    sc = conv(up, params["wx"], params["bx"], 0) if "wx" in params else up
    return _leaky(c + sc)


# ---------------------------------------------------------------------------
if __name__ == "__main__":
    IN_CHL, OUT_CHL = 16, 8          # in_chl != out_chl -> conv_x path exercised
    N, h, w = 4, 8, 8                # low-res input to be upsampled
    H, W = 16, 16                    # skip (and output) resolution

    key = jax.random.PRNGKey(0)
    kp, kx, ks = jax.random.split(key, 3)
    params = init_params(kp, IN_CHL, OUT_CHL, kernel_size=3)
    x = jax.random.normal(kx, (N, IN_CHL, h, w), dtype=jnp.float32)
    skip_x = jax.random.normal(ks, (N, OUT_CHL, H, W), dtype=jnp.float32)

    fwd = jax.jit(decode_res_block_forward)
    out = fwd(params, x, skip_x)
    jax.block_until_ready(out)
    assert out.shape == (N, OUT_CHL, H, W), out.shape

    ref = reference_forward(params, x, skip_x)
    max_err = float(jnp.max(jnp.abs(out - ref)))
    assert max_err < 1e-2, f"mismatch vs reference: max_err={max_err}"
    print("KERNEL_OK")
</pallas_src>

<mosaic_0001>
module attributes {stable_mosaic.version = 11 : i64} {
  func.func @kernel(%arg0: i32, %arg1: memref<2x16x64xf32, #tpu.memory_space<vmem>>, %arg2: memref<8x512xf32, #tpu.memory_space<vmem>>, %arg3: memref<64x256xf32, #tpu.memory_space<vmem>>, %arg4: memref<9x512xf32, #tpu.memory_space<vmem>>, %arg5: memref<9x8x16xf32, #tpu.memory_space<vmem>>, %arg6: memref<9x8x8xf32, #tpu.memory_space<vmem>>, %arg7: memref<8x1xf32, #tpu.memory_space<vmem>>, %arg8: memref<9x8x8xf32, #tpu.memory_space<vmem>>, %arg9: memref<8x1xf32, #tpu.memory_space<vmem>>, %arg10: memref<8x16xf32, #tpu.memory_space<vmem>>, %arg11: memref<8x1xf32, #tpu.memory_space<vmem>>, %arg12: memref<8x512xf32, #tpu.memory_space<vmem>>) attributes {dimension_semantics = [#tpu.dimension_semantics<parallel>], iteration_bounds = array<i64: 2>, scalar_prefetch = 0 : i64, scratch_operands = 0 : i64, tpu.core_type = #tpu.core_type<tc>, window_params = [{transform_indices = @transform_0, window_bounds = array<i64: 2, 16, 64>}, {transform_indices = @transform_1, window_bounds = array<i64: 8, 512>}, {pipeline_mode = #tpu.pipeline_mode<synchronous>, transform_indices = @transform_2, window_bounds = array<i64: 64, 256>}, {pipeline_mode = #tpu.pipeline_mode<synchronous>, transform_indices = @transform_3, window_bounds = array<i64: 9, 512>}, {pipeline_mode = #tpu.pipeline_mode<synchronous>, transform_indices = @transform_4, window_bounds = array<i64: 9, 8, 16>}, {pipeline_mode = #tpu.pipeline_mode<synchronous>, transform_indices = @transform_5, window_bounds = array<i64: 9, 8, 8>}, {pipeline_mode = #tpu.pipeline_mode<synchronous>, transform_indices = @transform_6, window_bounds = array<i64: 8, 1>}, {pipeline_mode = #tpu.pipeline_mode<synchronous>, transform_indices = @transform_7, window_bounds = array<i64: 9, 8, 8>}, {pipeline_mode = #tpu.pipeline_mode<synchronous>, transform_indices = @transform_8, window_bounds = array<i64: 8, 1>}, {pipeline_mode = #tpu.pipeline_mode<synchronous>, transform_indices = @transform_9, window_bounds = array<i64: 8, 16>}, {pipeline_mode = #tpu.pipeline_mode<synchronous>, transform_indices = @transform_10, window_bounds = array<i64: 8, 1>}, {transform_indices = @transform_11, window_bounds = array<i64: 8, 512>}]} {
    %c0 = arith.constant 0 : index
    %c0_0 = arith.constant 0 : index
    %0 = vector.load %arg3[%c0, %c0_0] : memref<64x256xf32, #tpu.memory_space<vmem>>, vector<64x256xf32>
    %c0_1 = arith.constant 0 : index
    %c0_2 = arith.constant 0 : index
    %1 = vector.load %arg4[%c0_1, %c0_2] : memref<9x512xf32, #tpu.memory_space<vmem>>, vector<9x512xf32>
    %2 = vector.extract_strided_slice %1 {offsets = [0, 0], sizes = [1, 512], strides = [1, 1]} : vector<9x512xf32> to vector<1x512xf32>
    %3 = vector.extract_strided_slice %1 {offsets = [1, 0], sizes = [1, 512], strides = [1, 1]} : vector<9x512xf32> to vector<1x512xf32>
    %4 = vector.extract_strided_slice %1 {offsets = [2, 0], sizes = [1, 512], strides = [1, 1]} : vector<9x512xf32> to vector<1x512xf32>
    %5 = vector.extract_strided_slice %1 {offsets = [3, 0], sizes = [1, 512], strides = [1, 1]} : vector<9x512xf32> to vector<1x512xf32>
    %6 = vector.extract_strided_slice %1 {offsets = [5, 0], sizes = [1, 512], strides = [1, 1]} : vector<9x512xf32> to vector<1x512xf32>
    %7 = vector.extract_strided_slice %1 {offsets = [6, 0], sizes = [1, 512], strides = [1, 1]} : vector<9x512xf32> to vector<1x512xf32>
    %8 = vector.extract_strided_slice %1 {offsets = [7, 0], sizes = [1, 512], strides = [1, 1]} : vector<9x512xf32> to vector<1x512xf32>
    %9 = vector.extract_strided_slice %1 {offsets = [8, 0], sizes = [1, 512], strides = [1, 1]} : vector<9x512xf32> to vector<1x512xf32>
    %c0_3 = arith.constant 0 : index
    %c0_4 = arith.constant 0 : index
    %c0_5 = arith.constant 0 : index
    %10 = vector.load %arg1[%c0_3, %c0_4, %c0_5] : memref<2x16x64xf32, #tpu.memory_space<vmem>>, vector<1x16x64xf32>
    %11 = vector.shape_cast %10 : vector<1x16x64xf32> to vector<16x64xf32>
    %c0_6 = arith.constant 0 : index
    %c0_7 = arith.constant 0 : index
    %12 = vector.load %arg10[%c0_6, %c0_7] : memref<8x16xf32, #tpu.memory_space<vmem>>, vector<8x16xf32>
    %cst = arith.constant dense<0.000000e+00> : vector<8x64xf32>
    %13 = tpu.matmul %12, %11, %cst {dimension_numbers = #tpu.dot_dimension_numbers<[1], [0], [0], [1], [0, 0, 1, 1], [], []>} : vector<8x16xf32>, vector<16x64xf32>, vector<8x64xf32> -> vector<8x64xf32>
    %14 = tpu.concatenate %11, %13 in 0 : vector<16x64xf32>, vector<8x64xf32> -> vector<24x64xf32>
    %cst_8 = arith.constant dense<0.000000e+00> : vector<24x256xf32>
    %15 = tpu.matmul %14, %0, %cst_8 {dimension_numbers = #tpu.dot_dimension_numbers<[1], [0], [0], [1], [0, 0, 1, 1], [], []>} : vector<24x64xf32>, vector<64x256xf32>, vector<24x256xf32> -> vector<24x256xf32>
    %16 = vector.extract_strided_slice %15 {offsets = [0, 0], sizes = [16, 256], strides = [1, 1]} : vector<24x256xf32> to vector<16x256xf32>
    %17 = vector.extract_strided_slice %15 {offsets = [16, 0], sizes = [8, 256], strides = [1, 1]} : vector<24x256xf32> to vector<8x256xf32>
    %c1 = arith.constant 1 : index
    %c0_9 = arith.constant 0 : index
    %c0_10 = arith.constant 0 : index
    %18 = vector.load %arg1[%c1, %c0_9, %c0_10] : memref<2x16x64xf32, #tpu.memory_space<vmem>>, vector<1x16x64xf32>
    %19 = vector.shape_cast %18 : vector<1x16x64xf32> to vector<16x64xf32>
    %c0_11 = arith.constant 0 : index
    %c0_12 = arith.constant 0 : index
    %20 = vector.load %arg10[%c0_11, %c0_12] : memref<8x16xf32, #tpu.memory_space<vmem>>, vector<8x16xf32>
    %cst_13 = arith.constant dense<0.000000e+00> : vector<8x64xf32>
    %21 = tpu.matmul %20, %19, %cst_13 {dimension_numbers = #tpu.dot_dimension_numbers<[1], [0], [0], [1], [0, 0, 1, 1], [], []>} : vector<8x16xf32>, vector<16x64xf32>, vector<8x64xf32> -> vector<8x64xf32>
    %22 = tpu.concatenate %19, %21 in 0 : vector<16x64xf32>, vector<8x64xf32> -> vector<24x64xf32>
    %cst_14 = arith.constant dense<0.000000e+00> : vector<24x256xf32>
    %23 = tpu.matmul %22, %0, %cst_14 {dimension_numbers = #tpu.dot_dimension_numbers<[1], [0], [0], [1], [0, 0, 1, 1], [], []>} : vector<24x64xf32>, vector<64x256xf32>, vector<24x256xf32> -> vector<24x256xf32>
    %24 = vector.extract_strided_slice %23 {offsets = [0, 0], sizes = [16, 256], strides = [1, 1]} : vector<24x256xf32> to vector<16x256xf32>
    %25 = vector.extract_strided_slice %23 {offsets = [16, 0], sizes = [8, 256], strides = [1, 1]} : vector<24x256xf32> to vector<8x256xf32>
    %26 = tpu.concatenate %16, %24 in 1 : vector<16x256xf32>, vector<16x256xf32> -> vector<16x512xf32>
    %c0_15 = arith.constant 0 : index
    %c0_16 = arith.constant 0 : index
    %27 = vector.load %arg2[%c0_15, %c0_16] : memref<8x512xf32, #tpu.memory_space<vmem>>, vector<8x512xf32>
    %28 = tpu.concatenate %17, %25 in 1 : vector<8x256xf32>, vector<8x256xf32> -> vector<8x512xf32>
    %c0_17 = arith.constant 0 : index
    %c0_18 = arith.constant 0 : index
    %29 = vector.load %arg11[%c0_17, %c0_18] : memref<8x1xf32, #tpu.memory_space<vmem>>, vector<8x1xf32>
    %30 = vector.broadcast %29 : vector<8x1xf32> to vector<8x512xf32>
    %31 = arith.addf %28, %30 : vector<8x512xf32>
    %c0_19 = arith.constant 0 : index
    %c0_20 = arith.constant 0 : index
    %32 = vector.load %arg7[%c0_19, %c0_20] : memref<8x1xf32, #tpu.memory_space<vmem>>, vector<8x1xf32>
    %c17_i32 = arith.constant 17 : i32
    %33 = tpu.dynamic_rotate %26 by %c17_i32 dim 1 : vector<16x512xf32>, i32 -> vector<16x512xf32>
    %c0_21 = arith.constant 0 : index
    %c0_22 = arith.constant 0 : index
    %c0_23 = arith.constant 0 : index
    %34 = vector.load %arg5[%c0_21, %c0_22, %c0_23] : memref<9x8x16xf32, #tpu.memory_space<vmem>>, vector<1x8x16xf32>
    %35 = vector.shape_cast %34 : vector<1x8x16xf32> to vector<8x16xf32>
    %cst_24 = arith.constant dense<0.000000e+00> : vector<8x512xf32>
    %36 = tpu.matmul %35, %33, %cst_24 {dimension_numbers = #tpu.dot_dimension_numbers<[1], [0], [0], [1], [0, 0, 1, 1], [], []>} : vector<8x16xf32>, vector<16x512xf32>, vector<8x512xf32> -> vector<8x512xf32>
    %c17_i32_25 = arith.constant 17 : i32
    %37 = tpu.dynamic_rotate %27 by %c17_i32_25 dim 1 : vector<8x512xf32>, i32 -> vector<8x512xf32>
    %c0_26 = arith.constant 0 : index
    %c0_27 = arith.constant 0 : index
    %c0_28 = arith.constant 0 : index
    %38 = vector.load %arg6[%c0_26, %c0_27, %c0_28] : memref<9x8x8xf32, #tpu.memory_space<vmem>>, vector<1x8x8xf32>
    %39 = vector.shape_cast %38 : vector<1x8x8xf32> to vector<8x8xf32>
    %cst_29 = arith.constant dense<0.000000e+00> : vector<8x512xf32>
    %40 = tpu.matmul %39, %37, %cst_29 {dimension_numbers = #tpu.dot_dimension_numbers<[1], [0], [0], [1], [0, 0, 1, 1], [], []>} : vector<8x8xf32>, vector<8x512xf32>, vector<8x512xf32> -> vector<8x512xf32>
    %41 = arith.addf %36, %40 : vector<8x512xf32>
    %42 = vector.broadcast %2 : vector<1x512xf32> to vector<8x512xf32>
    %43 = arith.mulf %41, %42 : vector<8x512xf32>
    %c16_i32 = arith.constant 16 : i32
    %44 = tpu.dynamic_rotate %26 by %c16_i32 dim 1 : vector<16x512xf32>, i32 -> vector<16x512xf32>
    %c1_30 = arith.constant 1 : index
    %c0_31 = arith.constant 0 : index
    %c0_32 = arith.constant 0 : index
    %45 = vector.load %arg5[%c1_30, %c0_31, %c0_32] : memref<9x8x16xf32, #tpu.memory_space<vmem>>, vector<1x8x16xf32>
    %46 = vector.shape_cast %45 : vector<1x8x16xf32> to vector<8x16xf32>
    %cst_33 = arith.constant dense<0.000000e+00> : vector<8x512xf32>
    %47 = tpu.matmul %46, %44, %cst_33 {dimension_numbers = #tpu.dot_dimension_numbers<[1], [0], [0], [1], [0, 0, 1, 1], [], []>} : vector<8x16xf32>, vector<16x512xf32>, vector<8x512xf32> -> vector<8x512xf32>
    %c16_i32_34 = arith.constant 16 : i32
    %48 = tpu.dynamic_rotate %27 by %c16_i32_34 dim 1 : vector<8x512xf32>, i32 -> vector<8x512xf32>
    %c1_35 = arith.constant 1 : index
    %c0_36 = arith.constant 0 : index
    %c0_37 = arith.constant 0 : index
    %49 = vector.load %arg6[%c1_35, %c0_36, %c0_37] : memref<9x8x8xf32, #tpu.memory_space<vmem>>, vector<1x8x8xf32>
    %50 = vector.shape_cast %49 : vector<1x8x8xf32> to vector<8x8xf32>
    %cst_38 = arith.constant dense<0.000000e+00> : vector<8x512xf32>
    %51 = tpu.matmul %50, %48, %cst_38 {dimension_numbers = #tpu.dot_dimension_numbers<[1], [0], [0], [1], [0, 0, 1, 1], [], []>} : vector<8x8xf32>, vector<8x512xf32>, vector<8x512xf32> -> vector<8x512xf32>
    %52 = arith.addf %47, %51 : vector<8x512xf32>
    %53 = vector.broadcast %3 : vector<1x512xf32> to vector<8x512xf32>
    %54 = arith.mulf %52, %53 : vector<8x512xf32>
    %55 = arith.addf %43, %54 : vector<8x512xf32>
    %c15_i32 = arith.constant 15 : i32
    %56 = tpu.dynamic_rotate %26 by %c15_i32 dim 1 : vector<16x512xf32>, i32 -> vector<16x512xf32>
    %c2 = arith.constant 2 : index
    %c0_39 = arith.constant 0 : index
    %c0_40 = arith.constant 0 : index
    %57 = vector.load %arg5[%c2, %c0_39, %c0_40] : memref<9x8x16xf32, #tpu.memory_space<vmem>>, vector<1x8x16xf32>
    %58 = vector.shape_cast %57 : vector<1x8x16xf32> to vector<8x16xf32>
    %cst_41 = arith.constant dense<0.000000e+00> : vector<8x512xf32>
    %59 = tpu.matmul %58, %56, %cst_41 {dimension_numbers = #tpu.dot_dimension_numbers<[1], [0], [0], [1], [0, 0, 1, 1], [], []>} : vector<8x16xf32>, vector<16x512xf32>, vector<8x512xf32> -> vector<8x512xf32>
    %c15_i32_42 = arith.constant 15 : i32
    %60 = tpu.dynamic_rotate %27 by %c15_i32_42 dim 1 : vector<8x512xf32>, i32 -> vector<8x512xf32>
    %c2_43 = arith.constant 2 : index
    %c0_44 = arith.constant 0 : index
    %c0_45 = arith.constant 0 : index
    %61 = vector.load %arg6[%c2_43, %c0_44, %c0_45] : memref<9x8x8xf32, #tpu.memory_space<vmem>>, vector<1x8x8xf32>
    %62 = vector.shape_cast %61 : vector<1x8x8xf32> to vector<8x8xf32>
    %cst_46 = arith.constant dense<0.000000e+00> : vector<8x512xf32>
    %63 = tpu.matmul %62, %60, %cst_46 {dimension_numbers = #tpu.dot_dimension_numbers<[1], [0], [0], [1], [0, 0, 1, 1], [], []>} : vector<8x8xf32>, vector<8x512xf32>, vector<8x512xf32> -> vector<8x512xf32>
    %64 = arith.addf %59, %63 : vector<8x512xf32>
    %65 = vector.broadcast %4 : vector<1x512xf32> to vector<8x512xf32>
    %66 = arith.mulf %64, %65 : vector<8x512xf32>
    %67 = arith.addf %55, %66 : vector<8x512xf32>
    %c1_i32 = arith.constant 1 : i32
    %68 = tpu.dynamic_rotate %26 by %c1_i32 dim 1 : vector<16x512xf32>, i32 -> vector<16x512xf32>
    %c3 = arith.constant 3 : index
    %c0_47 = arith.constant 0 : index
    %c0_48 = arith.constant 0 : index
    %69 = vector.load %arg5[%c3, %c0_47, %c0_48] : memref<9x8x16xf32, #tpu.memory_space<vmem>>, vector<1x8x16xf32>
    %70 = vector.shape_cast %69 : vector<1x8x16xf32> to vector<8x16xf32>
    %cst_49 = arith.constant dense<0.000000e+00> : vector<8x512xf32>
    %71 = tpu.matmul %70, %68, %cst_49 {dimension_numbers = #tpu.dot_dimension_numbers<[1], [0], [0], [1], [0, 0, 1, 1], [], []>} : vector<8x16xf32>, vector<16x512xf32>, vector<8x512xf32> -> vector<8x512xf32>
    %c1_i32_50 = arith.constant 1 : i32
    %72 = tpu.dynamic_rotate %27 by %c1_i32_50 dim 1 : vector<8x512xf32>, i32 -> vector<8x512xf32>
    %c3_51 = arith.constant 3 : index
    %c0_52 = arith.constant 0 : index
    %c0_53 = arith.constant 0 : index
    %73 = vector.load %arg6[%c3_51, %c0_52, %c0_53] : memref<9x8x8xf32, #tpu.memory_space<vmem>>, vector<1x8x8xf32>
    %74 = vector.shape_cast %73 : vector<1x8x8xf32> to vector<8x8xf32>
    %cst_54 = arith.constant dense<0.000000e+00> : vector<8x512xf32>
    %75 = tpu.matmul %74, %72, %cst_54 {dimension_numbers = #tpu.dot_dimension_numbers<[1], [0], [0], [1], [0, 0, 1, 1], [], []>} : vector<8x8xf32>, vector<8x512xf32>, vector<8x512xf32> -> vector<8x512xf32>
    %76 = arith.addf %71, %75 : vector<8x512xf32>
    %77 = vector.broadcast %5 : vector<1x512xf32> to vector<8x512xf32>
    %78 = arith.mulf %76, %77 : vector<8x512xf32>
    %79 = arith.addf %67, %78 : vector<8x512xf32>
    %c4 = arith.constant 4 : index
    %c0_55 = arith.constant 0 : index
    %c0_56 = arith.constant 0 : index
    %80 = vector.load %arg5[%c4, %c0_55, %c0_56] : memref<9x8x16xf32, #tpu.memory_space<vmem>>, vector<1x8x16xf32>
    %81 = vector.shape_cast %80 : vector<1x8x16xf32> to vector<8x16xf32>
    %cst_57 = arith.constant dense<0.000000e+00> : vector<8x512xf32>
    %82 = tpu.matmul %81, %26, %cst_57 {dimension_numbers = #tpu.dot_dimension_numbers<[1], [0], [0], [1], [0, 0, 1, 1], [], []>} : vector<8x16xf32>, vector<16x512xf32>, vector<8x512xf32> -> vector<8x512xf32>
    %c4_58 = arith.constant 4 : index
    %c0_59 = arith.constant 0 : index
    %c0_60 = arith.constant 0 : index
    %83 = vector.load %arg6[%c4_58, %c0_59, %c0_60] : memref<9x8x8xf32, #tpu.memory_space<vmem>>, vector<1x8x8xf32>
    %84 = vector.shape_cast %83 : vector<1x8x8xf32> to vector<8x8xf32>
    %cst_61 = arith.constant dense<0.000000e+00> : vector<8x512xf32>
    %85 = tpu.matmul %84, %27, %cst_61 {dimension_numbers = #tpu.dot_dimension_numbers<[1], [0], [0], [1], [0, 0, 1, 1], [], []>} : vector<8x8xf32>, vector<8x512xf32>, vector<8x512xf32> -> vector<8x512xf32>
    %86 = arith.addf %82, %85 : vector<8x512xf32>
    %87 = arith.addf %79, %86 : vector<8x512xf32>
    %c511_i32 = arith.constant 511 : i32
    %88 = tpu.dynamic_rotate %26 by %c511_i32 dim 1 : vector<16x512xf32>, i32 -> vector<16x512xf32>
    %c5 = arith.constant 5 : index
    %c0_62 = arith.constant 0 : index
    %c0_63 = arith.constant 0 : index
    %89 = vector.load %arg5[%c5, %c0_62, %c0_63] : memref<9x8x16xf32, #tpu.memory_space<vmem>>, vector<1x8x16xf32>
    %90 = vector.shape_cast %89 : vector<1x8x16xf32> to vector<8x16xf32>
    %cst_64 = arith.constant dense<0.000000e+00> : vector<8x512xf32>
    %91 = tpu.matmul %90, %88, %cst_64 {dimension_numbers = #tpu.dot_dimension_numbers<[1], [0], [0], [1], [0, 0, 1, 1], [], []>} : vector<8x16xf32>, vector<16x512xf32>, vector<8x512xf32> -> vector<8x512xf32>
    %c511_i32_65 = arith.constant 511 : i32
    %92 = tpu.dynamic_rotate %27 by %c511_i32_65 dim 1 : vector<8x512xf32>, i32 -> vector<8x512xf32>
    %c5_66 = arith.constant 5 : index
    %c0_67 = arith.constant 0 : index
    %c0_68 = arith.constant 0 : index
    %93 = vector.load %arg6[%c5_66, %c0_67, %c0_68] : memref<9x8x8xf32, #tpu.memory_space<vmem>>, vector<1x8x8xf32>
    %94 = vector.shape_cast %93 : vector<1x8x8xf32> to vector<8x8xf32>
    %cst_69 = arith.constant dense<0.000000e+00> : vector<8x512xf32>
    %95 = tpu.matmul %94, %92, %cst_69 {dimension_numbers = #tpu.dot_dimension_numbers<[1], [0], [0], [1], [0, 0, 1, 1], [], []>} : vector<8x8xf32>, vector<8x512xf32>, vector<8x512xf32> -> vector<8x512xf32>
    %96 = arith.addf %91, %95 : vector<8x512xf32>
    %97 = vector.broadcast %6 : vector<1x512xf32> to vector<8x512xf32>
    %98 = arith.mulf %96, %97 : vector<8x512xf32>
    %99 = arith.addf %87, %98 : vector<8x512xf32>
    %c497_i32 = arith.constant 497 : i32
    %100 = tpu.dynamic_rotate %26 by %c497_i32 dim 1 : vector<16x512xf32>, i32 -> vector<16x512xf32>
    %c6 = arith.constant 6 : index
    %c0_70 = arith.constant 0 : index
    %c0_71 = arith.constant 0 : index
    %101 = vector.load %arg5[%c6, %c0_70, %c0_71] : memref<9x8x16xf32, #tpu.memory_space<vmem>>, vector<1x8x16xf32>
    %102 = vector.shape_cast %101 : vector<1x8x16xf32> to vector<8x16xf32>
    %cst_72 = arith.constant dense<0.000000e+00> : vector<8x512xf32>
    %103 = tpu.matmul %102, %100, %cst_72 {dimension_numbers = #tpu.dot_dimension_numbers<[1], [0], [0], [1], [0, 0, 1, 1], [], []>} : vector<8x16xf32>, vector<16x512xf32>, vector<8x512xf32> -> vector<8x512xf32>
    %c497_i32_73 = arith.constant 497 : i32
    %104 = tpu.dynamic_rotate %27 by %c497_i32_73 dim 1 : vector<8x512xf32>, i32 -> vector<8x512xf32>
    %c6_74 = arith.constant 6 : index
    %c0_75 = arith.constant 0 : index
    %c0_76 = arith.constant 0 : index
    %105 = vector.load %arg6[%c6_74, %c0_75, %c0_76] : memref<9x8x8xf32, #tpu.memory_space<vmem>>, vector<1x8x8xf32>
    %106 = vector.shape_cast %105 : vector<1x8x8xf32> to vector<8x8xf32>
    %cst_77 = arith.constant dense<0.000000e+00> : vector<8x512xf32>
    %107 = tpu.matmul %106, %104, %cst_77 {dimension_numbers = #tpu.dot_dimension_numbers<[1], [0], [0], [1], [0, 0, 1, 1], [], []>} : vector<8x8xf32>, vector<8x512xf32>, vector<8x512xf32> -> vector<8x512xf32>
    %108 = arith.addf %103, %107 : vector<8x512xf32>
    %109 = vector.broadcast %7 : vector<1x512xf32> to vector<8x512xf32>
    %110 = arith.mulf %108, %109 : vector<8x512xf32>
    %111 = arith.addf %99, %110 : vector<8x512xf32>
    %c496_i32 = arith.constant 496 : i32
    %112 = tpu.dynamic_rotate %26 by %c496_i32 dim 1 : vector<16x512xf32>, i32 -> vector<16x512xf32>
    %c7 = arith.constant 7 : index
    %c0_78 = arith.constant 0 : index
    %c0_79 = arith.constant 0 : index
    %113 = vector.load %arg5[%c7, %c0_78, %c0_79] : memref<9x8x16xf32, #tpu.memory_space<vmem>>, vector<1x8x16xf32>
    %114 = vector.shape_cast %113 : vector<1x8x16xf32> to vector<8x16xf32>
    %cst_80 = arith.constant dense<0.000000e+00> : vector<8x512xf32>
    %115 = tpu.matmul %114, %112, %cst_80 {dimension_numbers = #tpu.dot_dimension_numbers<[1], [0], [0], [1], [0, 0, 1, 1], [], []>} : vector<8x16xf32>, vector<16x512xf32>, vector<8x512xf32> -> vector<8x512xf32>
    %c496_i32_81 = arith.constant 496 : i32
    %116 = tpu.dynamic_rotate %27 by %c496_i32_81 dim 1 : vector<8x512xf32>, i32 -> vector<8x512xf32>
    %c7_82 = arith.constant 7 : index
    %c0_83 = arith.constant 0 : index
    %c0_84 = arith.constant 0 : index
    %117 = vector.load %arg6[%c7_82, %c0_83, %c0_84] : memref<9x8x8xf32, #tpu.memory_space<vmem>>, vector<1x8x8xf32>
    %118 = vector.shape_cast %117 : vector<1x8x8xf32> to vector<8x8xf32>
    %cst_85 = arith.constant dense<0.000000e+00> : vector<8x512xf32>
    %119 = tpu.matmul %118, %116, %cst_85 {dimension_numbers = #tpu.dot_dimension_numbers<[1], [0], [0], [1], [0, 0, 1, 1], [], []>} : vector<8x8xf32>, vector<8x512xf32>, vector<8x512xf32> -> vector<8x512xf32>
    %120 = arith.addf %115, %119 : vector<8x512xf32>
    %121 = vector.broadcast %8 : vector<1x512xf32> to vector<8x512xf32>
    %122 = arith.mulf %120, %121 : vector<8x512xf32>
    %123 = arith.addf %111, %122 : vector<8x512xf32>
    %c495_i32 = arith.constant 495 : i32
    %124 = tpu.dynamic_rotate %26 by %c495_i32 dim 1 : vector<16x512xf32>, i32 -> vector<16x512xf32>
    %c8 = arith.constant 8 : index
    %c0_86 = arith.constant 0 : index
    %c0_87 = arith.constant 0 : index
    %125 = vector.load %arg5[%c8, %c0_86, %c0_87] : memref<9x8x16xf32, #tpu.memory_space<vmem>>, vector<1x8x16xf32>
    %126 = vector.shape_cast %125 : vector<1x8x16xf32> to vector<8x16xf32>
    %cst_88 = arith.constant dense<0.000000e+00> : vector<8x512xf32>
    %127 = tpu.matmul %126, %124, %cst_88 {dimension_numbers = #tpu.dot_dimension_numbers<[1], [0], [0], [1], [0, 0, 1, 1], [], []>} : vector<8x16xf32>, vector<16x512xf32>, vector<8x512xf32> -> vector<8x512xf32>
    %c495_i32_89 = arith.constant 495 : i32
    %128 = tpu.dynamic_rotate %27 by %c495_i32_89 dim 1 : vector<8x512xf32>, i32 -> vector<8x512xf32>
    %c8_90 = arith.constant 8 : index
    %c0_91 = arith.constant 0 : index
    %c0_92 = arith.constant 0 : index
    %129 = vector.load %arg6[%c8_90, %c0_91, %c0_92] : memref<9x8x8xf32, #tpu.memory_space<vmem>>, vector<1x8x8xf32>
    %130 = vector.shape_cast %129 : vector<1x8x8xf32> to vector<8x8xf32>
    %cst_93 = arith.constant dense<0.000000e+00> : vector<8x512xf32>
    %131 = tpu.matmul %130, %128, %cst_93 {dimension_numbers = #tpu.dot_dimension_numbers<[1], [0], [0], [1], [0, 0, 1, 1], [], []>} : vector<8x8xf32>, vector<8x512xf32>, vector<8x512xf32> -> vector<8x512xf32>
    %132 = arith.addf %127, %131 : vector<8x512xf32>
    %133 = vector.broadcast %9 : vector<1x512xf32> to vector<8x512xf32>
    %134 = arith.mulf %132, %133 : vector<8x512xf32>
    %135 = arith.addf %123, %134 : vector<8x512xf32>
    %136 = vector.broadcast %32 : vector<8x1xf32> to vector<8x512xf32>
    %137 = arith.addf %135, %136 : vector<8x512xf32>
    %cst_94 = arith.constant 0.000000e+00 : f32
    %138 = vector.broadcast %cst_94 : f32 to vector<8x512xf32>
    %139 = arith.cmpf oge, %137, %138 : vector<8x512xf32>
    %cst_95 = arith.constant 0.00999999977 : f32
    %140 = vector.broadcast %cst_95 : f32 to vector<8x512xf32>
    %141 = arith.mulf %140, %137 : vector<8x512xf32>
    %142 = arith.select %139, %137, %141 : vector<8x512xi1>, vector<8x512xf32>
    %c0_96 = arith.constant 0 : index
    %c0_97 = arith.constant 0 : index
    %143 = vector.load %arg9[%c0_96, %c0_97] : memref<8x1xf32, #tpu.memory_space<vmem>>, vector<8x1xf32>
    %c17_i32_98 = arith.constant 17 : i32
    %144 = tpu.dynamic_rotate %142 by %c17_i32_98 dim 1 : vector<8x512xf32>, i32 -> vector<8x512xf32>
    %c0_99 = arith.constant 0 : index
    %c0_100 = arith.constant 0 : index
    %c0_101 = arith.constant 0 : index
    %145 = vector.load %arg8[%c0_99, %c0_100, %c0_101] : memref<9x8x8xf32, #tpu.memory_space<vmem>>, vector<1x8x8xf32>
    %146 = vector.shape_cast %145 : vector<1x8x8xf32> to vector<8x8xf32>
    %cst_102 = arith.constant dense<0.000000e+00> : vector<8x512xf32>
    %147 = tpu.matmul %146, %144, %cst_102 {dimension_numbers = #tpu.dot_dimension_numbers<[1], [0], [0], [1], [0, 0, 1, 1], [], []>} : vector<8x8xf32>, vector<8x512xf32>, vector<8x512xf32> -> vector<8x512xf32>
    %148 = vector.broadcast %2 : vector<1x512xf32> to vector<8x512xf32>
    %149 = arith.mulf %147, %148 : vector<8x512xf32>
    %c16_i32_103 = arith.constant 16 : i32
    %150 = tpu.dynamic_rotate %142 by %c16_i32_103 dim 1 : vector<8x512xf32>, i32 -> vector<8x512xf32>
    %c1_104 = arith.constant 1 : index
    %c0_105 = arith.constant 0 : index
    %c0_106 = arith.constant 0 : index
    %151 = vector.load %arg8[%c1_104, %c0_105, %c0_106] : memref<9x8x8xf32, #tpu.memory_space<vmem>>, vector<1x8x8xf32>
    %152 = vector.shape_cast %151 : vector<1x8x8xf32> to vector<8x8xf32>
    %cst_107 = arith.constant dense<0.000000e+00> : vector<8x512xf32>
    %153 = tpu.matmul %152, %150, %cst_107 {dimension_numbers = #tpu.dot_dimension_numbers<[1], [0], [0], [1], [0, 0, 1, 1], [], []>} : vector<8x8xf32>, vector<8x512xf32>, vector<8x512xf32> -> vector<8x512xf32>
    %154 = vector.broadcast %3 : vector<1x512xf32> to vector<8x512xf32>
    %155 = arith.mulf %153, %154 : vector<8x512xf32>
    %156 = arith.addf %149, %155 : vector<8x512xf32>
    %c15_i32_108 = arith.constant 15 : i32
    %157 = tpu.dynamic_rotate %142 by %c15_i32_108 dim 1 : vector<8x512xf32>, i32 -> vector<8x512xf32>
    %c2_109 = arith.constant 2 : index
    %c0_110 = arith.constant 0 : index
    %c0_111 = arith.constant 0 : index
    %158 = vector.load %arg8[%c2_109, %c0_110, %c0_111] : memref<9x8x8xf32, #tpu.memory_space<vmem>>, vector<1x8x8xf32>
    %159 = vector.shape_cast %158 : vector<1x8x8xf32> to vector<8x8xf32>
    %cst_112 = arith.constant dense<0.000000e+00> : vector<8x512xf32>
    %160 = tpu.matmul %159, %157, %cst_112 {dimension_numbers = #tpu.dot_dimension_numbers<[1], [0], [0], [1], [0, 0, 1, 1], [], []>} : vector<8x8xf32>, vector<8x512xf32>, vector<8x512xf32> -> vector<8x512xf32>
    %161 = vector.broadcast %4 : vector<1x512xf32> to vector<8x512xf32>
    %162 = arith.mulf %160, %161 : vector<8x512xf32>
    %163 = arith.addf %156, %162 : vector<8x512xf32>
    %c1_i32_113 = arith.constant 1 : i32
    %164 = tpu.dynamic_rotate %142 by %c1_i32_113 dim 1 : vector<8x512xf32>, i32 -> vector<8x512xf32>
    %c3_114 = arith.constant 3 : index
    %c0_115 = arith.constant 0 : index
    %c0_116 = arith.constant 0 : index
    %165 = vector.load %arg8[%c3_114, %c0_115, %c0_116] : memref<9x8x8xf32, #tpu.memory_space<vmem>>, vector<1x8x8xf32>
    %166 = vector.shape_cast %165 : vector<1x8x8xf32> to vector<8x8xf32>
    %cst_117 = arith.constant dense<0.000000e+00> : vector<8x512xf32>
    %167 = tpu.matmul %166, %164, %cst_117 {dimension_numbers = #tpu.dot_dimension_numbers<[1], [0], [0], [1], [0, 0, 1, 1], [], []>} : vector<8x8xf32>, vector<8x512xf32>, vector<8x512xf32> -> vector<8x512xf32>
    %168 = vector.broadcast %5 : vector<1x512xf32> to vector<8x512xf32>
    %169 = arith.mulf %167, %168 : vector<8x512xf32>
    %170 = arith.addf %163, %169 : vector<8x512xf32>
    %c4_118 = arith.constant 4 : index
    %c0_119 = arith.constant 0 : index
    %c0_120 = arith.constant 0 : index
    %171 = vector.load %arg8[%c4_118, %c0_119, %c0_120] : memref<9x8x8xf32, #tpu.memory_space<vmem>>, vector<1x8x8xf32>
    %172 = vector.shape_cast %171 : vector<1x8x8xf32> to vector<8x8xf32>
    %cst_121 = arith.constant dense<0.000000e+00> : vector<8x512xf32>
    %173 = tpu.matmul %172, %142, %cst_121 {dimension_numbers = #tpu.dot_dimension_numbers<[1], [0], [0], [1], [0, 0, 1, 1], [], []>} : vector<8x8xf32>, vector<8x512xf32>, vector<8x512xf32> -> vector<8x512xf32>
    %174 = arith.addf %170, %173 : vector<8x512xf32>
    %c511_i32_122 = arith.constant 511 : i32
    %175 = tpu.dynamic_rotate %142 by %c511_i32_122 dim 1 : vector<8x512xf32>, i32 -> vector<8x512xf32>
    %c5_123 = arith.constant 5 : index
    %c0_124 = arith.constant 0 : index
    %c0_125 = arith.constant 0 : index
    %176 = vector.load %arg8[%c5_123, %c0_124, %c0_125] : memref<9x8x8xf32, #tpu.memory_space<vmem>>, vector<1x8x8xf32>
    %177 = vector.shape_cast %176 : vector<1x8x8xf32> to vector<8x8xf32>
    %cst_126 = arith.constant dense<0.000000e+00> : vector<8x512xf32>
    %178 = tpu.matmul %177, %175, %cst_126 {dimension_numbers = #tpu.dot_dimension_numbers<[1], [0], [0], [1], [0, 0, 1, 1], [], []>} : vector<8x8xf32>, vector<8x512xf32>, vector<8x512xf32> -> vector<8x512xf32>
    %179 = vector.broadcast %6 : vector<1x512xf32> to vector<8x512xf32>
    %180 = arith.mulf %178, %179 : vector<8x512xf32>
    %181 = arith.addf %174, %180 : vector<8x512xf32>
    %c497_i32_127 = arith.constant 497 : i32
    %182 = tpu.dynamic_rotate %142 by %c497_i32_127 dim 1 : vector<8x512xf32>, i32 -> vector<8x512xf32>
    %c6_128 = arith.constant 6 : index
    %c0_129 = arith.constant 0 : index
    %c0_130 = arith.constant 0 : index
    %183 = vector.load %arg8[%c6_128, %c0_129, %c0_130] : memref<9x8x8xf32, #tpu.memory_space<vmem>>, vector<1x8x8xf32>
    %184 = vector.shape_cast %183 : vector<1x8x8xf32> to vector<8x8xf32>
    %cst_131 = arith.constant dense<0.000000e+00> : vector<8x512xf32>
    %185 = tpu.matmul %184, %182, %cst_131 {dimension_numbers = #tpu.dot_dimension_numbers<[1], [0], [0], [1], [0, 0, 1, 1], [], []>} : vector<8x8xf32>, vector<8x512xf32>, vector<8x512xf32> -> vector<8x512xf32>
    %186 = vector.broadcast %7 : vector<1x512xf32> to vector<8x512xf32>
    %187 = arith.mulf %185, %186 : vector<8x512xf32>
    %188 = arith.addf %181, %187 : vector<8x512xf32>
    %c496_i32_132 = arith.constant 496 : i32
    %189 = tpu.dynamic_rotate %142 by %c496_i32_132 dim 1 : vector<8x512xf32>, i32 -> vector<8x512xf32>
    %c7_133 = arith.constant 7 : index
    %c0_134 = arith.constant 0 : index
    %c0_135 = arith.constant 0 : index
    %190 = vector.load %arg8[%c7_133, %c0_134, %c0_135] : memref<9x8x8xf32, #tpu.memory_space<vmem>>, vector<1x8x8xf32>
    %191 = vector.shape_cast %190 : vector<1x8x8xf32> to vector<8x8xf32>
    %cst_136 = arith.constant dense<0.000000e+00> : vector<8x512xf32>
    %192 = tpu.matmul %191, %189, %cst_136 {dimension_numbers = #tpu.dot_dimension_numbers<[1], [0], [0], [1], [0, 0, 1, 1], [], []>} : vector<8x8xf32>, vector<8x512xf32>, vector<8x512xf32> -> vector<8x512xf32>
    %193 = vector.broadcast %8 : vector<1x512xf32> to vector<8x512xf32>
    %194 = arith.mulf %192, %193 : vector<8x512xf32>
    %195 = arith.addf %188, %194 : vector<8x512xf32>
    %c495_i32_137 = arith.constant 495 : i32
    %196 = tpu.dynamic_rotate %142 by %c495_i32_137 dim 1 : vector<8x512xf32>, i32 -> vector<8x512xf32>
    %c8_138 = arith.constant 8 : index
    %c0_139 = arith.constant 0 : index
    %c0_140 = arith.constant 0 : index
    %197 = vector.load %arg8[%c8_138, %c0_139, %c0_140] : memref<9x8x8xf32, #tpu.memory_space<vmem>>, vector<1x8x8xf32>
    %198 = vector.shape_cast %197 : vector<1x8x8xf32> to vector<8x8xf32>
    %cst_141 = arith.constant dense<0.000000e+00> : vector<8x512xf32>
    %199 = tpu.matmul %198, %196, %cst_141 {dimension_numbers = #tpu.dot_dimension_numbers<[1], [0], [0], [1], [0, 0, 1, 1], [], []>} : vector<8x8xf32>, vector<8x512xf32>, vector<8x512xf32> -> vector<8x512xf32>
    %200 = vector.broadcast %9 : vector<1x512xf32> to vector<8x512xf32>
    %201 = arith.mulf %199, %200 : vector<8x512xf32>
    %202 = arith.addf %195, %201 : vector<8x512xf32>
    %203 = vector.broadcast %143 : vector<8x1xf32> to vector<8x512xf32>
    %204 = arith.addf %202, %203 : vector<8x512xf32>
    %cst_142 = arith.constant 0.000000e+00 : f32
    %205 = vector.broadcast %cst_142 : f32 to vector<8x512xf32>
    %206 = arith.cmpf oge, %204, %205 : vector<8x512xf32>
    %cst_143 = arith.constant 0.00999999977 : f32
    %207 = vector.broadcast %cst_143 : f32 to vector<8x512xf32>
    %208 = arith.mulf %207, %204 : vector<8x512xf32>
    %209 = arith.select %206, %204, %208 : vector<8x512xi1>, vector<8x512xf32>
    %210 = arith.addf %209, %31 : vector<8x512xf32>
    %cst_144 = arith.constant 0.000000e+00 : f32
    %211 = vector.broadcast %cst_144 : f32 to vector<8x512xf32>
    %212 = arith.cmpf oge, %210, %211 : vector<8x512xf32>
    %cst_145 = arith.constant 0.00999999977 : f32
    %213 = vector.broadcast %cst_145 : f32 to vector<8x512xf32>
    %214 = arith.mulf %213, %210 : vector<8x512xf32>
    %215 = arith.select %212, %210, %214 : vector<8x512xi1>, vector<8x512xf32>
    %c0_146 = arith.constant 0 : index
    %c0_147 = arith.constant 0 : index
    %216 = vector.load %arg12[%c0_146, %c0_147] : memref<8x512xf32, #tpu.memory_space<vmem>>, vector<8x512xf32>
    tpu.vector_store %arg12[%c0_146, %c0_147], %215 {strides = array<i32>} : memref<8x512xf32, #tpu.memory_space<vmem>>, vector<8x512xf32>,
    return
  }
  func.func @transform_0(%arg0: i32) -> (i32, i32, i32) {
    %c0_i32 = arith.constant 0 : i32
    %c0_i32_0 = arith.constant 0 : i32
    %c0_i32_1 = arith.constant 0 : i32
    return %arg0, %c0_i32, %c0_i32_0 : i32, i32, i32
  }
  func.func @transform_1(%arg0: i32) -> (i32, i32) {
    %c0_i32 = arith.constant 0 : i32
    %c0_i32_0 = arith.constant 0 : i32
    return %c0_i32, %arg0 : i32, i32
  }
  func.func @transform_2(%arg0: i32) -> (i32, i32) {
    %c0_i32 = arith.constant 0 : i32
    %c0_i32_0 = arith.constant 0 : i32
    %c0_i32_1 = arith.constant 0 : i32
    return %c0_i32, %c0_i32_0 : i32, i32
  }
  func.func @transform_3(%arg0: i32) -> (i32, i32) {
    %c0_i32 = arith.constant 0 : i32
    %c0_i32_0 = arith.constant 0 : i32
    %c0_i32_1 = arith.constant 0 : i32
    return %c0_i32, %c0_i32_0 : i32, i32
  }
  func.func @transform_4(%arg0: i32) -> (i32, i32, i32) {
    %c0_i32 = arith.constant 0 : i32
    %c0_i32_0 = arith.constant 0 : i32
    %c0_i32_1 = arith.constant 0 : i32
    %c0_i32_2 = arith.constant 0 : i32
    return %c0_i32, %c0_i32_0, %c0_i32_1 : i32, i32, i32
  }
  func.func @transform_5(%arg0: i32) -> (i32, i32, i32) {
    %c0_i32 = arith.constant 0 : i32
    %c0_i32_0 = arith.constant 0 : i32
    %c0_i32_1 = arith.constant 0 : i32
    %c0_i32_2 = arith.constant 0 : i32
    return %c0_i32, %c0_i32_0, %c0_i32_1 : i32, i32, i32
  }
  func.func @transform_6(%arg0: i32) -> (i32, i32) {
    %c0_i32 = arith.constant 0 : i32
    %c0_i32_0 = arith.constant 0 : i32
    %c0_i32_1 = arith.constant 0 : i32
    return %c0_i32, %c0_i32_0 : i32, i32
  }
  func.func @transform_7(%arg0: i32) -> (i32, i32, i32) {
    %c0_i32 = arith.constant 0 : i32
    %c0_i32_0 = arith.constant 0 : i32
    %c0_i32_1 = arith.constant 0 : i32
    %c0_i32_2 = arith.constant 0 : i32
    return %c0_i32, %c0_i32_0, %c0_i32_1 : i32, i32, i32
  }
  func.func @transform_8(%arg0: i32) -> (i32, i32) {
    %c0_i32 = arith.constant 0 : i32
    %c0_i32_0 = arith.constant 0 : i32
    %c0_i32_1 = arith.constant 0 : i32
    return %c0_i32, %c0_i32_0 : i32, i32
  }
  func.func @transform_9(%arg0: i32) -> (i32, i32) {
    %c0_i32 = arith.constant 0 : i32
    %c0_i32_0 = arith.constant 0 : i32
    %c0_i32_1 = arith.constant 0 : i32
    return %c0_i32, %c0_i32_0 : i32, i32
  }
  func.func @transform_10(%arg0: i32) -> (i32, i32) {
    %c0_i32 = arith.constant 0 : i32
    %c0_i32_0 = arith.constant 0 : i32
    %c0_i32_1 = arith.constant 0 : i32
    return %c0_i32, %c0_i32_0 : i32, i32
  }
  func.func @transform_11(%arg0: i32) -> (i32, i32) {
    %c0_i32 = arith.constant 0 : i32
    %c0_i32_0 = arith.constant 0 : i32
    return %c0_i32, %arg0 : i32, i32
  }
}

</mosaic_0001>

<bundles_post_ra>
// kernel: decode_res_block_forward.1
= control target key start
LH: loop header
LB: loop body
LE: loop exit
PB: predicated region body
PF: predicated region fallthrough
CT: control target
= control target key end

     0   :  { %s4188_s17 = smov 0   ;;  %s5185_s0 = inlined_call_operand.vmem [shape: f32[4,16,64], index: 0, kind: input, shape index: {}]   ;;  %s5186_s1 = inlined_call_operand.vmem [shape: f32[8,1024], index: 1, kind: input, shape index: {}]   ;;  %s5187_s2 = inlined_call_operand.vmem [shape: f32[64,256], index: 2, kind: input, shape index: {}]   ;;  %s5188_s3 = inlined_call_operand.vmem [shape: f32[9,512], index: 3, kind: input, shape index: {}]   ;;  %s5189_s4 = inlined_call_operand.vmem [shape: f32[9,8,16], index: 4, kind: input, shape index: {}]   ;;  %s5190_s5 = inlined_call_operand.vmem [shape: f32[9,8,8], index: 5, kind: input, shape index: {}]   ;;  %s5191_s6 = inlined_call_operand.vmem [shape: f32[8,1], index: 6, kind: input, shape index: {}]   ;;  %s5192_s7 = inlined_call_operand.vmem [shape: f32[9,8,8], index: 7, kind: input, shape index: {}]   ;;  %s5193_s8 = inlined_call_operand.vmem [shape: f32[8,1], index: 8, kind: input, shape index: {}]   ;;  %s5194_s9 = inlined_call_operand.vmem [shape: f32[8,16], index: 9, kind: input, shape index: {}]   ;;  %s5195_s10 = inlined_call_operand.vmem [shape: f32[8,1], index: 10, kind: input, shape index: {}]   ;;  %s5196_s11 = inlined_call_operand.vmem [shape: f32[8,1024], index: 11, kind: output, shape index: {}]  }
   0x1 LB: > { %s3605_s18 = sadd.s32 4294967295, %s4117_s17   ;;  %p3609_p0 = scmp.ge.s32.totalorder %s4117_s17, 1  ;;  %s4117_s17 = sphi %s4188_s17, %s21_s17  }
   0x2   : > { %p350_p1 = scmp.lt.s32.totalorder %s4117_s17, 3 }
   0x4   : > { %p351_p2 = pnand %p3609_p0, %p350_p1 }
   0x5   : > { %s3610_s25 = sshll.u32 (!%p351_p2), %s3605_s18, 1  ;;  %s3613_s28 = sshll.u32 (!%p351_p2), %s3605_s18, 2 }
   0x6   : > { %354 = sbr.rel (%p351_p2) target bundleno = 903 (0x387), region = 64  ;;  %p397_p3 = scmp.lt.s32.totalorder (!%p351_p2), %s3610_s25, 3 }
   0x7   : > { %p404_p4 = scmp.lt.s32.totalorder (!%p351_p2), %s3613_s28, 7  ;;  %s4119_s29 = smov (!%p351_p2), 17  }
   0x8   : > { %s4120_s30 = smov (!%p351_p2), 16   ;;  %s4121_s12 = smov (!%p351_p2), 15  }
   0x9   : > { %s4122_s14 = smov (!%p351_p2), 1   ;;  %s4123_s15 = smov (!%p351_p2), 127  }
   0xa   : > { %s4124_s16 = smov (!%p351_p2), 113   ;;  %s4125_s19 = smov (!%p351_p2), 112  }
   0xb   : > { %v429_v0 = vld [vmem:[%s5187_s2 + $0x70] sm:$0xff]  ;;  %v430_v1 = vld [vmem:[%s5187_s2 + $0x78] sm:$0xff]  ;;  %v427_v2 = vld [vmem:[%s5187_s2 + $0x60] sm:$0xff]  ;;  %s5218_s25 = smov (!%p397_p3, %s3610_s25), 3  ;;  %s5220_s28 = smov (!%p404_p4, %s3613_s28), 7  ;;  %vm466_vm0 = vcmask 523264   ;;  %v643_v45 = vlaneseq }
   0xc   : > { %484 = vmatpush.msra.mxu1 %v429_v0  ;;  %510 = vmatpush.msra.mxu2 %v430_v1  ;;  %v428_v3 = vld [vmem:[%s5187_s2 + $0x68] sm:$0xff]  ;;  %v425_v4 = vld [vmem:[%s5187_s2 + $0x50] sm:$0xff]  ;;  %v426_v5 = vld [vmem:[%s5187_s2 + $0x58] sm:$0xff]  ;;  %s3767_s18 = sshll.u32 %s5218_s25, 4  ;;  %s3614_s13 = sshll.u32 %s5220_s28, 3  ;;  %vm442_vm1 = vcmask 130048  }
   0xd   : > { %v423_v6 = vld [vmem:[%s5187_s2 + $0x40] sm:$0xff]  ;;  %v424_v7 = vld [vmem:[%s5187_s2 + $0x48] sm:$0xff]  ;;  %v421_v8 = vld [vmem:[%s5187_s2 + $0x30] sm:$0xff]  ;;  %s401_s24 = scalar_lea.vmem %s5185_s0, %s3767_s18  ;;  %s4249_s21 = scalar_lea.vmem %s5186_s1, %s3614_s13  ;;  %v4350_v49 = vand.u32 127, %v643_v45  ;;  %vm668_vm3 = vcmask 64512  }
   0xe   : > { %485 = vmatpush.msra.mxu1 %v427_v2  ;;  %511 = vmatpush.msra.mxu2 %v428_v3  ;;  %v422_v9 = vld [vmem:[%s5187_s2 + $0x38] sm:$0xff]  ;;  %v440_v10 = vld [vmem:[%s401_s24 + $0x8] sm:$0xff]  ;;  %v439_v12 = vld [vmem:[%s401_s24] sm:$0xff]  ;;  %s4126_s18 = smov 111  }
   0xf   : > { %v3625_v11 = vld [vmem:[%s401_s24 + $0x18] sm:$0xff]  ;;  %460 = vmatpush.msra.mxu0 %v440_v10  ;;  %v3624_v13 = vld [vmem:[%s401_s24 + $0x10] sm:$0xff]  ;;  %v419_v14 = vld [vmem:[%s5187_s2 + $0x20] sm:$0xff]  ;;  %vm645_vm2 = vcmp.lt.s32.totalorder %v4350_v49, 17  ;;  %vm859_vm4 = vcmp.lt.s32.totalorder %v4350_v49, 16  ;;  %vm1078_vm5 = vcmp.lt.s32.totalorder %v4350_v49, 15 }
  0x10   : > { %486 = vmatpush.msra.mxu1 %v425_v4  ;;  %512 = vmatpush.msra.mxu2 %v426_v5  ;;  %v420_v15 = vld [vmem:[%s5187_s2 + $0x28] sm:$0xff]  ;;  %v417_v16 = vld [vmem:[%s5187_s2 + $0x10] sm:$0xff]  ;;  %v418_v17 = vld [vmem:[%s5187_s2 + $0x18] sm:$0xff]  ;;  %vm1297_vm6 = vcmp.lt.s32.totalorder %v4350_v49, 1  ;;  %vm1690_vm7 = vcmp.lt.s32.totalorder %v4350_v49, 127  ;;  %vm1909_vm8 = vcmp.lt.s32.totalorder %v4350_v49, 113 }
  0x11   : > { %545 = vmatpush.msra.mxu3 %v3625_v11  ;;  %461 = vmatpush.msra.mxu0 %v439_v12  ;;  %v415_v18 = vld [vmem:[%s5187_s2] sm:$0xff]  ;;  %v416_v19 = vld [vmem:[%s5187_s2 + $0x8] sm:$0xff]  ;;  %v4274_v24 = vld [vmem:[%s4249_s21 + $0x10] sm:$0xff]  ;;  %vm2128_vm9 = vcmp.lt.s32.totalorder %v4350_v49, 112  ;;  %vm2347_vm10 = vcmp.lt.s32.totalorder %v4350_v49, 111 }
  0x12   : > { %487 = vmatpush.msra.mxu1 %v423_v6  ;;  %513 = vmatpush.msra.mxu2 %v424_v7  ;;  %v4258_v20 = vld [vmem:[%s4249_s21] sm:$0xff]  ;;  %v4261_v21 = vld [vmem:[%s4249_s21 + $0x8] sm:$0xff]  ;;  %v4277_v25 = vld [vmem:[%s4249_s21 + $0x18] sm:$0xff] }
  0x13   : > { %546 = vmatpush.msra.mxu3 %v3624_v13  ;;  %568 = vmatpush.msrb.mxu0 %v429_v0  ;;  %v441_v22 = vld [vmem:[%s5194_s9] sm:$0xff]  ;;  %v3785_v23 = vpack.i.bf16 %v4261_v21, %v4258_v20  ;;  %v3790_v26 = vpack.i.bf16 %v4277_v25, %v4274_v24  ;;  %v3905_v41 = vpack.i.bf16 %v4274_v24, %v4261_v21 }
  0x14   : > { %488 = vmatpush.msra.mxu1 %v421_v8  ;;  %514 = vmatpush.msra.mxu2 %v422_v9  ;;  %v3910_v44 = vpack.i.bf16 %v4277_v25, %v4258_v20  ;;  %v667_v59 = vld [vmem:[%s5190_s5] sm:$0xff] }
  0x15   : > { %594 = vmatpush.msrb.mxu3 %v430_v1  ;;  %569 = vmatpush.msrb.mxu0 %v427_v2 }
  0x16   : > { %489 = vmatpush.msra.mxu1 %v419_v14  ;;  %515 = vmatpush.msra.mxu2 %v420_v15 }
  0x17   : > { %595 = vmatpush.msrb.mxu3 %v428_v3  ;;  %570 = vmatpush.msrb.mxu0 %v425_v4 }
  0x18   : > { %490 = vmatpush.msra.mxu1 %v417_v16  ;;  %516 = vmatpush.msra.mxu2 %v418_v17 }
  0x19   : > { %596 = vmatpush.msrb.mxu3 %v426_v5  ;;  %571 = vmatpush.msrb.mxu0 %v423_v6  ;;  %v654_v5 = vld [vmem:[%s5189_s4] sm:$0xff] }
  0x1a   : > { %491 = vmatpush.msra.mxu1 %v415_v18  ;;  %517 = vmatpush.msra.mxu2 %v416_v19 }
  0x1b   : > { %3618 = vmatmul.msk.f32.vlgmr.msra.gmra.mxu1 %vm466_vm0, %v439_v12  ;;  %3621 = vmatmul.msk.f32.vlgmr.msra.gmra.mxu2 %vm466_vm0, %v439_v12 }
  0x1c   : > { %597 = vmatpush.msrb.mxu3 %v424_v7  ;;  %3617 = vmatmul.msk.f32.vlgmr.msra.gmra.mxu0 %vm442_vm1, %v441_v22 }
  0x1d   : > { %3626 = vmatmul.msk.f32.vlgmr.msra.gmra.mxu3 %vm442_vm1, %v441_v22  ;;  %572 = vmatpush.msrb.mxu0 %v421_v8 }
  0x1e   : > { %598 = vmatpush.msrb.mxu3 %v422_v9  ;;  %3786 = vrot.lane.b32.xlu0 %v3785_v23, %s4119_s29 }
  0x1f   : > { %573 = vmatpush.msrb.mxu0 %v419_v14 }
  0x20   : > { %599 = vmatpush.msrb.mxu3 %v420_v15 }
  0x21   : > { %574 = vmatpush.msrb.mxu0 %v417_v16 }
  0x22   : > { %600 = vmatpush.msrb.mxu3 %v418_v17 }
  0x23   : > { %3619 = vmatmul.msk.f32.gmra.mxu1 %vm466_vm0, %v440_v10  ;;  %3622 = vmatmul.msk.f32.gmra.mxu2 %vm466_vm0, %v440_v10 }
  0x24   : > { %575 = vmatpush.msrb.mxu0 %v415_v18  ;;  %601 = vmatpush.msrb.mxu3 %v416_v19 }
  0x25   : > { %3627 = vmatmul.msk.f32.vlgmr.msrb.gmra.mxu0 %vm466_vm0, %v3624_v13  ;;  %3630 = vmatmul.msk.f32.vlgmr.msrb.gmra.mxu3 %vm466_vm0, %v3624_v13 }
  0x26   : > { %3791 = vrot.lane.b32.xlu0 %v3790_v26, %s4119_s29 }
  0x2d   : > { %3628 = vmatmul.msk.f32.gmra.mxu0 %vm466_vm0, %v3625_v11  ;;  %3631 = vmatmul.msk.f32.gmra.mxu3 %vm466_vm0, %v3625_v11 }
  0x2e   : > { %3816 = vrot.lane.b32.xlu0 %v3785_v23, %s4120_s30 }
  0x90   : > { %v3787_v43 = vpop.permute.xlu0 %3786 }
  0x91   : > { %v3789_v46 = vunpack.i.h.bf16 %v3787_v43  ;;  %v3788_v47 = vunpack.i.l.bf16 %v3787_v43 }
  0x93   : > { %v665_v54 = vsel %vm645_vm2, %v3788_v47, %v3789_v46 }
  0x94   : > { %707 = vmatpush.msrb.mxu2 %v665_v54 }
  0x98   : > { %v4289_v28 = vpop.f32.mrf.mxu1  ;;  %v3792_v48 = vpop.permute.xlu0 %3791 }
  0x99   : > { %v463_v27 = vpop.f32.mrf.mxu0  ;;  %v3794_v50 = vunpack.i.h.bf16 %v3792_v48  ;;  %v3793_v51 = vunpack.i.l.bf16 %v3792_v48 }
  0x9a   : > { %3620 = vmatmul.msk.f32.gmra.mxu1 %vm466_vm0, %v463_v27  ;;  %3623 = vmatmul.msk.f32.gmra.mxu2 %vm466_vm0, %v463_v27 }
  0x9b   : > { %v666_v53 = vsel %vm645_vm2, %v3794_v50, %v3788_v47  ;;  %v664_v55 = vsel %vm645_vm2, %v3789_v46, %v3793_v51  ;;  %v663_v57 = vsel %vm645_vm2, %v3793_v51, %v3794_v50 }
  0x9c   : > { %687 = vmatpush.msrb.mxu1 %v666_v53  ;;  %727 = vmatpush.msra.mxu0 %v664_v55 }
  0x9d   : > { %747 = vmatpush.msra.mxu3 %v663_v57 }
  0x9e   : > { %v4293_v29 = vpop.f32.mrf.mxu2 }
  0x9f   : > { %v3830_v30 = vpack.i.bf16 %v4293_v29, %v4289_v28 }
  0xa0   : > { %v548_v31 = vpop.f32.mrf.mxu3  ;;  %v4300_v32 = vpop.f32.mrf.mxu1 }
  0xa1   : > { %3831 = vrot.lane.b32.xlu0 %v3830_v30, %s4120_s30  ;;  %3629 = vmatmul.msk.f32.gmra.mxu0 %vm466_vm0, %v548_v31  ;;  %v3920_v42 = vpack.i.bf16 %v4293_v29, %v4300_v32  ;;  %v3817_v0 = vpop.permute.xlu0 %3816 }
  0xa2   : > { %3632 = vmatmul.msk.f32.gmra.mxu3 %vm466_vm0, %v548_v31  ;;  %v4302_v33 = vpop.f32.mrf.mxu0  ;;  %3633 = vmatmul.msk.f32.vlgmr.msrb.gmra.mxu1 %vm668_vm3, %v667_v59  ;;  %v3819_v14 = vunpack.i.h.bf16 %v3817_v0  ;;  %v3818_v15 = vunpack.i.l.bf16 %v3817_v0 }
  0xa3   : > { %3634 = vmatmul.msk.f32.vlgmr.msrb.gmra.mxu2 %vm668_vm3, %v667_v59 }
  0xa6   : > { %v4304_v34 = vpop.f32.mrf.mxu2 }
  0xa7   : > { %v3795_v35 = vpack.i.bf16 %v4304_v34, %v4300_v32 }
  0xa8   : > { %v4308_v36 = vpop.f32.mrf.mxu3 }
  0xa9   : > { %3841 = vrot.lane.b32.xlu0 %v3785_v23, %s4121_s12  ;;  %3796 = vrot.lane.b32.xlu1 %v3795_v35, %s4119_s29  ;;  %v3810_v40 = vpack.i.bf16 %v4308_v36, %v4302_v33  ;;  %v4372_v58 = vpack.i.bf16 %v4308_v36, %v4289_v28 }
  0xaa   : > { %v4312_v37 = vpop.f32.mrf.mxu0  ;;  %3635 = vmatmul.msk.f32.vlgmr.msra.gmra.mxu0 %vm668_vm3, %v667_v59  ;;  %3636 = vmatmul.msk.f32.vlgmr.msra.gmra.mxu3 %vm668_vm3, %v667_v59 }
  0xab   : > { %v3915_v56 = vpack.i.bf16 %v4312_v37, %v4304_v34 }
  0xb0   : > { %v4314_v38 = vpop.f32.mrf.mxu3 }
  0xb1   : > { %3861 = vrot.lane.b32.xlu0 %v3830_v30, %s4121_s12  ;;  %3801 = vrot.lane.b32.xlu1 %v3830_v30, %s4119_s29  ;;  %v3805_v39 = vpack.i.bf16 %v4314_v38, %v4312_v37  ;;  %v3935_v52 = vpack.i.bf16 %v4314_v38, %v4302_v33 }
  0xb3   : > { %3806 = vrot.lane.b32.xlu2 %v3805_v39, %s4119_s29 }
  0xb9   : > { %3871 = vrot.lane.b32.xlu0 %v3785_v23, %s4122_s14  ;;  %3821 = vrot.lane.b32.xlu1 %v3790_v26, %s4120_s30 }
  0xbb   : > { %3811 = vrot.lane.b32.xlu2 %v3810_v40, %s4119_s29 }
  0xc1   : > { %3891 = vrot.lane.b32.xlu0 %v3830_v30, %s4122_s14  ;;  %3846 = vrot.lane.b32.xlu1 %v3805_v39, %s4120_s30 }
  0xc3   : > { %3826 = vrot.lane.b32.xlu2 %v3795_v35, %s4120_s30 }
  0xc9   : > { %3906 = vrot.lane.b32.xlu0 %v3905_v41, %s4123_s15  ;;  %3851 = vrot.lane.b32.xlu1 %v3790_v26, %s4121_s12 }
  0xcb   : > { %3836 = vrot.lane.b32.xlu2 %v3810_v40, %s4120_s30 }
  0xd1   : > { %3921 = vrot.lane.b32.xlu0 %v3920_v42, %s4123_s15  ;;  %3876 = vrot.lane.b32.xlu1 %v3805_v39, %s4121_s12 }
  0xd3   : > { %3856 = vrot.lane.b32.xlu2 %v3795_v35, %s4121_s12 }
  0xd9   : > { %3931 = vrot.lane.b32.xlu0 %v3905_v41, %s4124_s16  ;;  %3881 = vrot.lane.b32.xlu1 %v3790_v26, %s4122_s14 }
  0xdb   : > { %3866 = vrot.lane.b32.xlu2 %v3810_v40, %s4121_s12 }
  0xe1   : > { %3951 = vrot.lane.b32.xlu0 %v3920_v42, %s4124_s16  ;;  %3896 = vrot.lane.b32.xlu1 %v3805_v39, %s4122_s14 }
  0xe3   : > { %3886 = vrot.lane.b32.xlu2 %v3795_v35, %s4122_s14  ;;  %v880_v35 = vsel %vm859_vm4, %v3818_v15, %v3819_v14 }
  0xe9   : > { %3961 = vrot.lane.b32.xlu0 %v3905_v41, %s4125_s19  ;;  %3911 = vrot.lane.b32.xlu1 %v3910_v44, %s4123_s15 }
  0xeb   : > { %3901 = vrot.lane.b32.xlu2 %v3810_v40, %s4122_s14 }
  0xf1   : > { %3981 = vrot.lane.b32.xlu0 %v3920_v42, %s4125_s19  ;;  %3936 = vrot.lane.b32.xlu1 %v3935_v52, %s4123_s15 }
  0xf3   : > { %3916 = vrot.lane.b32.xlu2 %v3915_v56, %s4123_s15 }
  0xf9   : > { %3991 = vrot.lane.b32.xlu0 %v3905_v41, %s4126_s18  ;;  %3941 = vrot.lane.b32.xlu1 %v3910_v44, %s4124_s16 }
  0xfb   : > { %3926 = vrot.lane.b32.xlu2 %v4372_v58, %s4123_s15 }
 0x101   : > { %4011 = vrot.lane.b32.xlu0 %v3920_v42, %s4126_s18  ;;  %3966 = vrot.lane.b32.xlu1 %v3935_v52, %s4124_s16 }
 0x103   : > { %3946 = vrot.lane.b32.xlu2 %v3915_v56, %s4124_s16 }
 0x109   : > { %3971 = vrot.lane.b32.xlu1 %v3910_v44, %s4125_s19 }
 0x10b   : > { %3956 = vrot.lane.b32.xlu2 %v4372_v58, %s4124_s16 }
 0x10d   : > { %v3807_v60 = vpop.permute.xlu2 %3806 }
 0x10e   : > { %v3809_v61 = vunpack.i.h.bf16 %v3807_v60  ;;  %v3808_v62 = vunpack.i.l.bf16 %v3807_v60 }
 0x110   : > { %v647_v63 = vsel %vm645_vm2, %v3808_v62, %v3809_v61 }
 0x111   : > { %3996 = vrot.lane.b32.xlu1 %v3935_v52, %s4125_s19  ;;  %829 = vmatpush.msrb.mxu3 %v647_v63 }
 0x113   : > { %3976 = vrot.lane.b32.xlu2 %v3915_v56, %s4125_s19  ;;  %v4402_v7 = vpop.permute.xlu0 %3831 }
 0x114   : > { %v3834_v39 = vunpack.i.h.bf16 %v4402_v7  ;;  %v3833_v40 = vunpack.i.l.bf16 %v4402_v7 }
 0x115   : > { %v3812_v1 = vpop.permute.xlu2 %3811 }
 0x116   : > { %v3814_v2 = vunpack.i.h.bf16 %v3812_v1  ;;  %v3813_v3 = vunpack.i.l.bf16 %v3812_v1  ;;  %v864_v47 = vsel %vm859_vm4, %v3833_v40, %v3834_v39 }
 0x118   : > { %v646_v4 = vsel %vm645_vm2, %v3813_v3, %v3814_v2 }
 0x119   : > { %4001 = vrot.lane.b32.xlu1 %v3910_v44, %s4126_s18  ;;  %830 = vmatpush.msrb.mxu3 %v646_v4 }
 0x11a   : > { %3640 = vmatmul.msk.f32.vlgmr.msrb.gmra.mxu3 %vm442_vm1, %v654_v5 }
 0x11b   : > { %v3797_v6 = vpop.permute.xlu1 %3796  ;;  %3986 = vrot.lane.b32.xlu2 %v4372_v58, %s4125_s19  ;;  %v4417_v22 = vpop.permute.xlu0 %3841 }
 0x11c   : > { %v3799_v8 = vunpack.i.h.bf16 %v3797_v6  ;;  %v3798_v9 = vunpack.i.l.bf16 %v3797_v6  ;;  %v3844_v42 = vunpack.i.h.bf16 %v4417_v22  ;;  %v3843_v43 = vunpack.i.l.bf16 %v4417_v22 }
 0x11d   : > { %v4404_v10 = vpop.permute.xlu2 %3826 }
 0x11e   : > { %v653_v11 = vsel %vm645_vm2, %v3809_v61, %v3798_v9  ;;  %v651_v12 = vsel %vm645_vm2, %v3798_v9, %v3799_v8  ;;  %v649_v13 = vsel %vm645_vm2, %v3799_v8, %v3808_v62  ;;  %v3829_v23 = vunpack.i.h.bf16 %v4404_v10 }
 0x11f   : > { %769 = vmatpush.msra.mxu1 %v653_v11  ;;  %789 = vmatpush.msra.mxu2 %v651_v12  ;;  %v3828_v26 = vunpack.i.l.bf16 %v4404_v10  ;;  %v1099_v54 = vsel %vm1078_vm5, %v3843_v43, %v3844_v42 }
 0x120   : > { %809 = vmatpush.msrb.mxu0 %v649_v13 }
 0x121   : > { %4016 = vrot.lane.b32.xlu1 %v3935_v52, %s4126_s18  ;;  %v865_v41 = vsel %vm859_vm4, %v3828_v26, %v3829_v23  ;;  %v3642_v52 = vld [vmem:[%s5190_s5 + $0x8] sm:$0xff] }
 0x123   : > { %v3802_v16 = vpop.permute.xlu1 %3801  ;;  %4006 = vrot.lane.b32.xlu2 %v3915_v56, %s4126_s18  ;;  %v4460_v55 = vpop.permute.xlu0 %3861 }
 0x124   : > { %v3804_v17 = vunpack.i.h.bf16 %v3802_v16  ;;  %v3803_v18 = vunpack.i.l.bf16 %v3802_v16  ;;  %v3864_v4 = vunpack.i.h.bf16 %v4460_v55 }
 0x125   : > { %v4414_v19 = vpop.permute.xlu2 %3836 }
 0x126   : > { %v652_v27 = vsel %vm645_vm2, %v3814_v2, %v3803_v18  ;;  %v650_v30 = vsel %vm645_vm2, %v3803_v18, %v3804_v17  ;;  %v648_v31 = vsel %vm645_vm2, %v3804_v17, %v3813_v3  ;;  %v3839_v57 = vunpack.i.h.bf16 %v4414_v19  ;;  %v3641_v2 = vld [vmem:[%s5189_s4 + $0x8] sm:$0xff] }
 0x127   : > { %770 = vmatpush.msra.mxu1 %v652_v27  ;;  %790 = vmatpush.msra.mxu2 %v650_v30  ;;  %v3838_v60 = vunpack.i.l.bf16 %v4414_v19 }
 0x128   : > { %810 = vmatpush.msrb.mxu0 %v648_v31  ;;  %3637 = vmatmul.msk.f32.vlgmr.msra.gmra.mxu1 %vm442_vm1, %v654_v5  ;;  %v866_v6 = vsel %vm859_vm4, %v3839_v57, %v3833_v40 }
 0x129   : > { %3638 = vmatmul.msk.f32.vlgmr.msra.gmra.mxu2 %vm442_vm1, %v654_v5  ;;  %3639 = vmatmul.msk.f32.vlgmr.msrb.gmra.mxu0 %vm442_vm1, %v654_v5  ;;  %v3863_v5 = vunpack.i.l.bf16 %v4460_v55  ;;  %v862_v8 = vsel %vm859_vm4, %v3834_v39, %v3838_v60  ;;  %v860_v10 = vsel %vm859_vm4, %v3838_v60, %v3839_v57 }
 0x12a   : > { %922 = vmatpush.msrb.mxu2 %v880_v35 }
 0x12b   : > { %v3822_v44 = vpop.permute.xlu1 %3821  ;;  %4021 = vrot.lane.b32.xlu2 %v4372_v58, %s4126_s18  ;;  %v4490_v9 = vpop.permute.xlu0 %3871 }
 0x12c   : > { %1004 = vmatpush.msra.mxu2 %v865_v41  ;;  %v3824_v45 = vunpack.i.h.bf16 %v3822_v44  ;;  %v3823_v46 = vunpack.i.l.bf16 %v3822_v44  ;;  %v3874_v11 = vunpack.i.h.bf16 %v4490_v9  ;;  %v3873_v12 = vunpack.i.l.bf16 %v4490_v9 }
 0x12d   : > { %v4442_v48 = vpop.permute.xlu2 %3856 }
 0x12e   : > { %1005 = vmatpush.msra.mxu2 %v864_v47  ;;  %v881_v50 = vsel %vm859_vm4, %v3824_v45, %v3818_v15  ;;  %v879_v51 = vsel %vm859_vm4, %v3819_v14, %v3823_v46  ;;  %v878_v53 = vsel %vm859_vm4, %v3823_v46, %v3824_v45  ;;  %v3859_v61 = vunpack.i.h.bf16 %v4442_v48  ;;  %v3651_v45 = vld [vmem:[%s5189_s4 + $0x10] sm:$0xff] }
 0x12f   : > { %902 = vmatpush.msrb.mxu1 %v881_v50  ;;  %942 = vmatpush.msra.mxu0 %v879_v51  ;;  %v3858_v62 = vunpack.i.l.bf16 %v4442_v48  ;;  %v1083_v14 = vsel %vm1078_vm5, %v3863_v5, %v3864_v4  ;;  %v1318_v27 = vsel %vm1297_vm6, %v3873_v12, %v3874_v11 }
 0x130   : > { %962 = vmatpush.msra.mxu3 %v878_v53  ;;  %3643 = vmatmul.msk.f32.vlgmr.msrb.gmra.mxu1 %vm668_vm3, %v3642_v52 }
 0x131   : > { %3644 = vmatmul.msk.f32.vlgmr.msrb.gmra.mxu2 %vm668_vm3, %v3642_v52  ;;  %3645 = vmatmul.msk.f32.vlgmr.msra.gmra.mxu0 %vm668_vm3, %v3642_v52  ;;  %v1084_v7 = vsel %vm1078_vm5, %v3858_v62, %v3859_v61 }
 0x132   : > { %3646 = vmatmul.msk.f32.vlgmr.msra.gmra.mxu3 %vm668_vm3, %v3642_v52  ;;  %1141 = vmatpush.msrb.mxu2 %v1099_v54 }
 0x133   : > { %v3847_v56 = vpop.permute.xlu1 %3846  ;;  %v4526_v39 = vpop.permute.xlu0 %3891 }
 0x134   : > { %v3849_v58 = vunpack.i.h.bf16 %v3847_v56  ;;  %v3848_v59 = vunpack.i.l.bf16 %v3847_v56  ;;  %v3894_v48 = vunpack.i.h.bf16 %v4526_v39  ;;  %v3893_v50 = vunpack.i.l.bf16 %v4526_v39 }
 0x135   : > { %v4470_v63 = vpop.permute.xlu2 %3866 }
 0x136   : > { %v867_v0 = vsel %vm859_vm4, %v3849_v58, %v3828_v26  ;;  %v863_v1 = vsel %vm859_vm4, %v3829_v23, %v3848_v59  ;;  %v861_v3 = vsel %vm859_vm4, %v3848_v59, %v3849_v58  ;;  %v3652_v23 = vld [vmem:[%s5190_s5 + $0x10] sm:$0xff]  ;;  %v3869_v30 = vunpack.i.h.bf16 %v4470_v63 }
 0x137   : > { %984 = vmatpush.msra.mxu1 %v867_v0  ;;  %1024 = vmatpush.msrb.mxu0 %v863_v1  ;;  %v3868_v40 = vunpack.i.l.bf16 %v4470_v63  ;;  %v1302_v56 = vsel %vm1297_vm6, %v3893_v50, %v3894_v48 }
 0x138   : > { %1044 = vmatpush.msrb.mxu3 %v861_v3  ;;  %v1085_v51 = vsel %vm1078_vm5, %v3869_v30, %v3863_v5 }
 0x139   : > { %3648 = vmatmul.msk.f32.vlgmr.msra.gmra.mxu2 %vm442_vm1, %v3641_v2  ;;  %985 = vmatpush.msra.mxu1 %v866_v6  ;;  %v1081_v53 = vsel %vm1078_vm5, %v3864_v4, %v3868_v40  ;;  %v1079_v54 = vsel %vm1078_vm5, %v3868_v40, %v3869_v30 }
 0x13a   : > { %1223 = vmatpush.msra.mxu2 %v1084_v7  ;;  %1025 = vmatpush.msrb.mxu0 %v862_v8 }
 0x13b   : > { %1045 = vmatpush.msrb.mxu3 %v860_v10  ;;  %3647 = vmatmul.msk.f32.vlgmr.msra.gmra.mxu1 %vm442_vm1, %v3641_v2  ;;  %v3852_v13 = vpop.permute.xlu1 %3851 }
 0x13c   : > { %3649 = vmatmul.msk.f32.vlgmr.msrb.gmra.mxu0 %vm442_vm1, %v3641_v2  ;;  %3650 = vmatmul.msk.f32.vlgmr.msrb.gmra.mxu3 %vm442_vm1, %v3641_v2  ;;  %v3854_v15 = vunpack.i.h.bf16 %v3852_v13  ;;  %v3853_v16 = vunpack.i.l.bf16 %v3852_v13 }
 0x13d   : > { %1224 = vmatpush.msra.mxu2 %v1083_v14  ;;  %v4501_v17 = vpop.permute.xlu2 %3886 }
 0x13e   : > { %v1100_v18 = vsel %vm1078_vm5, %v3854_v15, %v3843_v43  ;;  %v1098_v19 = vsel %vm1078_vm5, %v3844_v42, %v3853_v16  ;;  %v1097_v26 = vsel %vm1078_vm5, %v3853_v16, %v3854_v15  ;;  %v3889_v41 = vunpack.i.h.bf16 %v4501_v17 }
 0x13f   : > { %1121 = vmatpush.msrb.mxu1 %v1100_v18  ;;  %1161 = vmatpush.msra.mxu0 %v1098_v19  ;;  %v3888_v42 = vunpack.i.l.bf16 %v4501_v17  ;;  %v3672_v18 = vld [vmem:[%s5190_s5 + $0x20] sm:$0xff] }
 0x140   : > { %1181 = vmatpush.msra.mxu3 %v1097_v26 }
 0x141   : > { %3654 = vmatmul.msk.f32.vlgmr.msrb.gmra.mxu2 %vm668_vm3, %v3652_v23  ;;  %v1303_v52 = vsel %vm1297_vm6, %v3888_v42, %v3889_v41 }
 0x142   : > { %1360 = vmatpush.msrb.mxu2 %v1318_v27 }
 0x143   : > { %3653 = vmatmul.msk.f32.vlgmr.msrb.gmra.mxu1 %vm668_vm3, %v3652_v23  ;;  %v3877_v22 = vpop.permute.xlu1 %3876 }
 0x144   : > { %3655 = vmatmul.msk.f32.vlgmr.msra.gmra.mxu0 %vm668_vm3, %v3652_v23  ;;  %3656 = vmatmul.msk.f32.vlgmr.msra.gmra.mxu3 %vm668_vm3, %v3652_v23  ;;  %v3879_v31 = vunpack.i.h.bf16 %v3877_v22  ;;  %v3878_v35 = vunpack.i.l.bf16 %v3877_v22 }
 0x145   : > { %v3902_v46 = vpop.permute.xlu2 %3901 }
 0x146   : > { %v1086_v43 = vsel %vm1078_vm5, %v3879_v31, %v3858_v62  ;;  %v1082_v44 = vsel %vm1078_vm5, %v3859_v61, %v3878_v35  ;;  %v1080_v47 = vsel %vm1078_vm5, %v3878_v35, %v3879_v31  ;;  %v3662_v61 = vld [vmem:[%s5190_s5 + $0x18] sm:$0xff]  ;;  %v3907_v62 = vpop.permute.xlu0 %3906  ;;  %v3904_v2 = vunpack.i.h.bf16 %v3902_v46 }
 0x147   : > { %1203 = vmatpush.msra.mxu1 %v1086_v43  ;;  %1243 = vmatpush.msrb.mxu0 %v1082_v44  ;;  %v3903_v5 = vunpack.i.l.bf16 %v3902_v46  ;;  %v3909_v15 = vunpack.i.h.bf16 %v3907_v62  ;;  %v3908_v16 = vunpack.i.l.bf16 %v3907_v62  ;;  %v3681_v62 = vld [vmem:[%s5189_s4 + $0x28] sm:$0xff] }
 0x148   : > { %1263 = vmatpush.msrb.mxu3 %v1080_v47  ;;  %v1304_v9 = vsel %vm1297_vm6, %v3904_v2, %v3893_v50 }
 0x149   : > { %3658 = vmatmul.msk.f32.vlgmr.msra.gmra.mxu2 %vm442_vm1, %v3651_v45  ;;  %1204 = vmatpush.msra.mxu1 %v1085_v51 }
 0x14a   : > { %1442 = vmatpush.msra.mxu2 %v1303_v52  ;;  %1244 = vmatpush.msrb.mxu0 %v1081_v53  ;;  %v3682_v53 = vld [vmem:[%s5190_s5 + $0x28] sm:$0xff] }
 0x14b   : > { %1264 = vmatpush.msrb.mxu3 %v1079_v54  ;;  %3657 = vmatmul.msk.f32.vlgmr.msra.gmra.mxu1 %vm442_vm1, %v3651_v45  ;;  %v3882_v55 = vpop.permute.xlu1 %3881 }
 0x14c   : > { %3659 = vmatmul.msk.f32.vlgmr.msrb.gmra.mxu0 %vm442_vm1, %v3651_v45  ;;  %3660 = vmatmul.msk.f32.vlgmr.msrb.gmra.mxu3 %vm442_vm1, %v3651_v45  ;;  %v3884_v57 = vunpack.i.h.bf16 %v3882_v55  ;;  %v3883_v58 = vunpack.i.l.bf16 %v3882_v55 }
 0x14d   : > { %1443 = vmatpush.msra.mxu2 %v1302_v56  ;;  %v4567_v0 = vpop.permute.xlu2 %3916 }
 0x14e   : > { %v1319_v59 = vsel %vm1297_vm6, %v3884_v57, %v3873_v12  ;;  %v1317_v60 = vsel %vm1297_vm6, %v3874_v11, %v3883_v58  ;;  %v1316_v63 = vsel %vm1297_vm6, %v3883_v58, %v3884_v57  ;;  %v4585_v10 = vpop.permute.xlu0 %3921  ;;  %v1300_v11 = vsel %vm1297_vm6, %v3894_v48, %v3903_v5 }
 0x14f   : > { %1340 = vmatpush.msrb.mxu1 %v1319_v59  ;;  %1380 = vmatpush.msra.mxu0 %v1317_v60  ;;  %v1298_v12 = vsel %vm1297_vm6, %v3903_v5, %v3904_v2  ;;  %v3924_v26 = vunpack.i.h.bf16 %v4585_v10  ;;  %v3923_v27 = vunpack.i.l.bf16 %v4585_v10 }
 0x150   : > { %1400 = vmatpush.msra.mxu3 %v1316_v63 }
 0x151   : > { %3664 = vmatmul.msk.f32.vlgmr.msrb.gmra.mxu2 %vm668_vm3, %v3662_v61 }
 0x152   : > { %1542 = vmatpush.msrb.mxu2 %v4261_v21  ;;  %v3661_v21 = vld [vmem:[%s5189_s4 + $0x18] sm:$0xff] }
 0x153   : > { %3663 = vmatmul.msk.f32.vlgmr.msrb.gmra.mxu1 %vm668_vm3, %v3662_v61  ;;  %v3897_v1 = vpop.permute.xlu1 %3896 }
 0x154   : > { %3665 = vmatmul.msk.f32.vlgmr.msra.gmra.mxu0 %vm668_vm3, %v3662_v61  ;;  %3666 = vmatmul.msk.f32.vlgmr.msra.gmra.mxu3 %vm668_vm3, %v3662_v61  ;;  %v3899_v3 = vunpack.i.h.bf16 %v3897_v1  ;;  %v3898_v4 = vunpack.i.l.bf16 %v3897_v1 }
 0x155   : > { %v4593_v13 = vpop.permute.xlu2 %3926 }
 0x156   : > { %v1305_v6 = vsel %vm1297_vm6, %v3899_v3, %v3888_v42  ;;  %v1301_v7 = vsel %vm1297_vm6, %v3889_v41, %v3898_v4  ;;  %v1299_v8 = vsel %vm1297_vm6, %v3898_v4, %v3899_v3  ;;  %v3928_v22 = vunpack.i.l.bf16 %v4593_v13 }
 0x157   : > { %1422 = vmatpush.msra.mxu1 %v1305_v6  ;;  %1462 = vmatpush.msrb.mxu0 %v1301_v7  ;;  %v3929_v31 = vunpack.i.h.bf16 %v4593_v13 }
 0x158   : > { %1482 = vmatpush.msrb.mxu3 %v1299_v8  ;;  %v1695_v48 = vsel %vm1690_vm7, %v3928_v22, %v3924_v26 }
 0x159   : > { %3668 = vmatmul.msk.f32.vlgmr.msra.gmra.mxu2 %vm442_vm1, %v3661_v21  ;;  %1423 = vmatpush.msra.mxu1 %v1304_v9  ;;  %v1697_v52 = vsel %vm1690_vm7, %v3929_v31, %v3928_v22 }
 0x15a   : > { %1624 = vmatpush.msra.mxu2 %v4304_v34  ;;  %1463 = vmatpush.msrb.mxu0 %v1300_v11 }
 0x15b   : > { %1483 = vmatpush.msrb.mxu3 %v1298_v12  ;;  %3667 = vmatmul.msk.f32.vlgmr.msra.gmra.mxu1 %vm442_vm1, %v3661_v21  ;;  %v3912_v14 = vpop.permute.xlu1 %3911 }
 0x15c   : > { %3669 = vmatmul.msk.f32.vlgmr.msrb.gmra.mxu0 %vm442_vm1, %v3661_v21  ;;  %3670 = vmatmul.msk.f32.vlgmr.msrb.gmra.mxu3 %vm442_vm1, %v3661_v21  ;;  %v3914_v34 = vunpack.i.h.bf16 %v3912_v14  ;;  %v3913_v17 = vunpack.i.l.bf16 %v3912_v14 }
 0x15d   : > { %1522 = vmatpush.msrb.mxu1 %v4258_v20  ;;  %1562 = vmatpush.msra.mxu0 %v4274_v24  ;;  %v1710_v20 = vsel %vm1690_vm7, %v3908_v16, %v3909_v15 }
 0x15e   : > { %1582 = vmatpush.msra.mxu3 %v4277_v25  ;;  %1625 = vmatpush.msra.mxu2 %v4293_v29  ;;  %v1711_v24 = vsel %vm1690_vm7, %v3913_v17, %v3908_v16  ;;  %v1709_v25 = vsel %vm1690_vm7, %v3909_v15, %v3914_v34  ;;  %v3932_v29 = vpop.permute.xlu0 %3931 }
 0x15f   : > { %1604 = vmatpush.msra.mxu1 %v4300_v32  ;;  %1644 = vmatpush.msrb.mxu0 %v4312_v37  ;;  %v3918_v37 = vunpack.i.l.bf16 %v4567_v0  ;;  %v3934_v39 = vunpack.i.h.bf16 %v3932_v29  ;;  %v3933_v40 = vunpack.i.l.bf16 %v3932_v29 }
 0x160   : > { %1664 = vmatpush.msrb.mxu3 %v4314_v38  ;;  %v3671_v38 = vld [vmem:[%s5189_s4 + $0x20] sm:$0xff] }
 0x161   : > { %1605 = vmatpush.msra.mxu1 %v4289_v28  ;;  %1645 = vmatpush.msrb.mxu0 %v4302_v33  ;;  %v1712_v28 = vsel %vm1690_vm7, %v3914_v34, %v3913_v17  ;;  %v4624_v33 = vpop.permute.xlu2 %3946  ;;  %v1696_v41 = vsel %vm1690_vm7, %v3923_v27, %v3918_v37  ;;  %v1929_v54 = vsel %vm1909_vm8, %v3933_v40, %v3934_v39  ;;  %v3692_v17 = vld [vmem:[%s5190_s5 + $0x30] sm:$0xff] }
 0x162   : > { %1665 = vmatpush.msrb.mxu3 %v4308_v36  ;;  %3674 = vmatmul.msk.f32.vlgmr.msrb.gmra.mxu2 %vm668_vm3, %v3672_v18  ;;  %v3919_v36 = vunpack.i.h.bf16 %v4567_v0  ;;  %v3949_v59 = vunpack.i.h.bf16 %v4624_v33  ;;  %v3948_v60 = vunpack.i.l.bf16 %v4624_v33 }
 0x163   : > { %3673 = vmatmul.msk.f32.vlgmr.msrb.gmra.mxu1 %vm668_vm3, %v3672_v18  ;;  %v3937_v32 = vpop.permute.xlu1 %3936  ;;  %1753 = vmatpush.msrb.mxu2 %v1710_v20 }
 0x164   : > { %3675 = vmatmul.msk.f32.vlgmr.msra.gmra.mxu0 %vm668_vm3, %v3672_v18  ;;  %3676 = vmatmul.msk.f32.vlgmr.msra.gmra.mxu3 %vm668_vm3, %v3672_v18  ;;  %v3938_v19 = vunpack.i.l.bf16 %v3937_v32  ;;  %v3939_v23 = vunpack.i.h.bf16 %v3937_v32  ;;  %v1694_v30 = vsel %vm1690_vm7, %v3918_v37, %v3919_v36  ;;  %v1913_v5 = vsel %vm1909_vm8, %v3948_v60, %v3949_v59  ;;  %v3691_v37 = vld [vmem:[%s5189_s4 + $0x30] sm:$0xff] }
 0x165   : > { %1733 = vmatpush.msrb.mxu1 %v1711_v24  ;;  %1773 = vmatpush.msra.mxu0 %v1709_v25 }
 0x166   : > { %1793 = vmatpush.msra.mxu3 %v1712_v28  ;;  %v1693_v42 = vsel %vm1690_vm7, %v3924_v26, %v3938_v19  ;;  %v4645_v43 = vpop.permute.xlu0 %3951  ;;  %v1692_v44 = vsel %vm1690_vm7, %v3919_v36, %v3939_v23  ;;  %v1698_v45 = vsel %vm1690_vm7, %v3939_v23, %v3923_v27  ;;  %v1691_v51 = vsel %vm1690_vm7, %v3938_v19, %v3929_v31 }
 0x167   : > { %v3954_v2 = vunpack.i.h.bf16 %v4645_v43  ;;  %v3953_v3 = vunpack.i.l.bf16 %v4645_v43 }
 0x169   : > { %v3957_v50 = vpop.permute.xlu2 %3956  ;;  %v1915_v9 = vsel %vm1909_vm8, %v3953_v3, %v3948_v60 }
 0x16a   : > { %3678 = vmatmul.msk.f32.vlgmr.msra.gmra.mxu2 %vm442_vm1, %v3671_v38  ;;  %v3958_v4 = vunpack.i.l.bf16 %v3957_v50  ;;  %v3959_v6 = vunpack.i.h.bf16 %v3957_v50 }
 0x16b   : > { %1835 = vmatpush.msra.mxu2 %v1694_v30  ;;  %3677 = vmatmul.msk.f32.vlgmr.msra.gmra.mxu1 %vm442_vm1, %v3671_v38  ;;  %v3942_v35 = vpop.permute.xlu1 %3941 }
 0x16c   : > { %3679 = vmatmul.msk.f32.vlgmr.msrb.gmra.mxu0 %vm442_vm1, %v3671_v38  ;;  %3680 = vmatmul.msk.f32.vlgmr.msrb.gmra.mxu3 %vm442_vm1, %v3671_v38  ;;  %v3944_v46 = vunpack.i.h.bf16 %v3942_v35  ;;  %v3943_v47 = vunpack.i.l.bf16 %v3942_v35  ;;  %v1914_v15 = vsel %vm1909_vm8, %v3958_v4, %v3954_v2  ;;  %v1916_v34 = vsel %vm1909_vm8, %v3959_v6, %v3958_v4  ;;  %v4768_v4 = vpop.f32.mrf.mxu2 }
 0x16d   : > { %1815 = vmatpush.msra.mxu1 %v1696_v41  ;;  %1836 = vmatpush.msra.mxu2 %v1693_v42 }
 0x16e   : > { %1855 = vmatpush.msrb.mxu0 %v1692_v44  ;;  %1875 = vmatpush.msrb.mxu3 %v1698_v45  ;;  %v1930_v55 = vsel %vm1909_vm8, %v3943_v47, %v3933_v40  ;;  %v1928_v56 = vsel %vm1909_vm8, %v3934_v39, %v3944_v46  ;;  %v1931_v58 = vsel %vm1909_vm8, %v3944_v46, %v3943_v47  ;;  %v3962_v61 = vpop.permute.xlu0 %3961 }
 0x16f   : > { %1816 = vmatpush.msra.mxu1 %v1695_v48  ;;  %v3964_v21 = vunpack.i.h.bf16 %v3962_v61  ;;  %v3963_v8 = vunpack.i.l.bf16 %v3962_v61 }
 0x170   : > { %1856 = vmatpush.msrb.mxu0 %v1691_v51  ;;  %1876 = vmatpush.msrb.mxu3 %v1697_v52  ;;  %v3702_v52 = vld [vmem:[%s5190_s5 + $0x38] sm:$0xff] }
 0x171   : > { %v4678_v0 = vpop.permute.xlu2 %3976  ;;  %v2148_v18 = vsel %vm2128_vm9, %v3963_v8, %v3964_v21 }
 0x172   : > { %3684 = vmatmul.msk.f32.vlgmr.msrb.gmra.mxu2 %vm668_vm3, %v3682_v53  ;;  %v3979_v33 = vunpack.i.h.bf16 %v4678_v0  ;;  %v3978_v36 = vunpack.i.l.bf16 %v4678_v0  ;;  %v3701_v0 = vld [vmem:[%s5189_s4 + $0x38] sm:$0xff] }
 0x173   : > { %3683 = vmatmul.msk.f32.vlgmr.msrb.gmra.mxu1 %vm668_vm3, %v3682_v53  ;;  %v3967_v57 = vpop.permute.xlu1 %3966  ;;  %1972 = vmatpush.msrb.mxu2 %v1929_v54 }
 0x174   : > { %3685 = vmatmul.msk.f32.vlgmr.msra.gmra.mxu0 %vm668_vm3, %v3682_v53  ;;  %3686 = vmatmul.msk.f32.vlgmr.msra.gmra.mxu3 %vm668_vm3, %v3682_v53  ;;  %v3968_v63 = vunpack.i.l.bf16 %v3967_v57  ;;  %v3969_v1 = vunpack.i.h.bf16 %v3967_v57  ;;  %v2132_v22 = vsel %vm2128_vm9, %v3978_v36, %v3979_v33  ;;  %v4757_v57 = vpop.f32.mrf.mxu1 }
 0x175   : > { %1952 = vmatpush.msrb.mxu1 %v1930_v55  ;;  %1992 = vmatpush.msra.mxu0 %v1928_v56 }
 0x176   : > { %2012 = vmatpush.msra.mxu3 %v1931_v58  ;;  %v1912_v10 = vsel %vm1909_vm8, %v3954_v2, %v3968_v63  ;;  %v1911_v11 = vsel %vm1909_vm8, %v3949_v59, %v3969_v1  ;;  %v1917_v12 = vsel %vm1909_vm8, %v3969_v1, %v3953_v3  ;;  %v1910_v16 = vsel %vm1909_vm8, %v3968_v63, %v3959_v6  ;;  %v3982_v20 = vpop.permute.xlu0 %3981  ;;  %v4759_v58 = vpop.f32.mrf.mxu0 }
 0x177   : > { %v3984_v23 = vunpack.i.h.bf16 %v3982_v20  ;;  %v3983_v26 = vunpack.i.l.bf16 %v3982_v20  ;;  %v4766_v2 = vpop.f32.mrf.mxu3  ;;  %v4127_v20 = vmov 0  }
 0x178   : > { %4025 = vset.pattern.permute.xlu0 %v4127_v20  ;;  %4106 = vset.pattern.permute.xlu1 %v4127_v20 }
 0x179   : > { %v3987_v29 = vpop.permute.xlu2 %3986  ;;  %v2134_v41 = vsel %vm2128_vm9, %v3983_v26, %v3978_v36 }
 0x17a   : > { %3688 = vmatmul.msk.f32.vlgmr.msra.gmra.mxu2 %vm442_vm1, %v3681_v62  ;;  %v3988_v27 = vunpack.i.l.bf16 %v3987_v29  ;;  %v3989_v31 = vunpack.i.h.bf16 %v3987_v29 }
 0x17b   : > { %2054 = vmatpush.msra.mxu2 %v1913_v5  ;;  %3687 = vmatmul.msk.f32.vlgmr.msra.gmra.mxu1 %vm442_vm1, %v3681_v62  ;;  %v3972_v7 = vpop.permute.xlu1 %3971 }
 0x17c   : > { %3689 = vmatmul.msk.f32.vlgmr.msrb.gmra.mxu0 %vm442_vm1, %v3681_v62  ;;  %3690 = vmatmul.msk.f32.vlgmr.msrb.gmra.mxu3 %vm442_vm1, %v3681_v62  ;;  %v3974_v13 = vunpack.i.h.bf16 %v3972_v7  ;;  %v3973_v14 = vunpack.i.l.bf16 %v3972_v7  ;;  %v2133_v48 = vsel %vm2128_vm9, %v3988_v27, %v3984_v23  ;;  %v2135_v51 = vsel %vm2128_vm9, %v3989_v31, %v3988_v27 }
 0x17d   : > { %2034 = vmatpush.msra.mxu1 %v1915_v9  ;;  %2055 = vmatpush.msra.mxu2 %v1912_v10 }
 0x17e   : > { %2074 = vmatpush.msrb.mxu0 %v1911_v11  ;;  %2094 = vmatpush.msrb.mxu3 %v1917_v12  ;;  %v2149_v24 = vsel %vm2128_vm9, %v3973_v14, %v3963_v8  ;;  %v2147_v25 = vsel %vm2128_vm9, %v3964_v21, %v3974_v13  ;;  %v2150_v28 = vsel %vm2128_vm9, %v3974_v13, %v3973_v14  ;;  %v3992_v30 = vpop.permute.xlu0 %3991  ;;  %v689_v11 = vpop.f32.mrf.mxu1 }
 0x17f   : > { %2035 = vmatpush.msra.mxu1 %v1914_v15  ;;  %v3994_v39 = vunpack.i.h.bf16 %v3992_v30  ;;  %v3993_v40 = vunpack.i.l.bf16 %v3992_v30  ;;  %v729_v12 = vpop.f32.mrf.mxu0 }
 0x180   : > { %2075 = vmatpush.msrb.mxu0 %v1910_v16  ;;  %2095 = vmatpush.msrb.mxu3 %v1916_v34  ;;  %v626_v16 = vld [vmem:[%s5191_s6] sm:$0xff] }
 0x181   : > { %v4007_v43 = vpop.permute.xlu2 %4006  ;;  %v2367_v53 = vsel %vm2347_vm10, %v3993_v40, %v3994_v39  ;;  %2552 = vperm.xlu0 %4025, %v626_v16  }
 0x182   : > { %3694 = vmatmul.msk.f32.vlgmr.msrb.gmra.mxu2 %vm668_vm3, %v3692_v17  ;;  %v4009_v60 = vunpack.i.h.bf16 %v4007_v43  ;;  %v4008_v61 = vunpack.i.l.bf16 %v4007_v43 }
 0x183   : > { %3693 = vmatmul.msk.f32.vlgmr.msrb.gmra.mxu1 %vm668_vm3, %v3692_v17  ;;  %v3997_v32 = vpop.permute.xlu1 %3996  ;;  %2191 = vmatpush.msrb.mxu2 %v2148_v18  ;;  %v3712_v18 = vld [vmem:[%s5190_s5 + $0x40] sm:$0xff] }
 0x184   : > { %3695 = vmatmul.msk.f32.vlgmr.msra.gmra.mxu0 %vm668_vm3, %v3692_v17  ;;  %3696 = vmatmul.msk.f32.vlgmr.msra.gmra.mxu3 %vm668_vm3, %v3692_v17  ;;  %v3998_v38 = vunpack.i.l.bf16 %v3997_v32  ;;  %v3999_v19 = vunpack.i.h.bf16 %v3997_v32  ;;  %v2351_v21 = vsel %vm2347_vm10, %v4008_v61, %v4009_v60 }
 0x185   : > { %2171 = vmatpush.msrb.mxu1 %v2149_v24  ;;  %2211 = vmatpush.msra.mxu0 %v2147_v25  ;;  %v749_v24 = vpop.f32.mrf.mxu3  ;;  %v709_v25 = vpop.f32.mrf.mxu2 }
 0x186   : > { %2231 = vmatpush.msra.mxu3 %v2150_v28  ;;  %v2131_v42 = vsel %vm2128_vm9, %v3984_v23, %v3998_v38  ;;  %v2130_v44 = vsel %vm2128_vm9, %v3979_v33, %v3999_v19  ;;  %v2136_v45 = vsel %vm2128_vm9, %v3999_v19, %v3983_v26  ;;  %v2129_v50 = vsel %vm2128_vm9, %v3998_v38, %v3989_v31  ;;  %v4012_v62 = vpop.permute.xlu0 %4011  ;;  %v3711_v28 = vld [vmem:[%s5189_s4 + $0x40] sm:$0xff] }
 0x187   : > { %v4014_v5 = vunpack.i.h.bf16 %v4012_v62  ;;  %v4013_v6 = vunpack.i.l.bf16 %v4012_v62 }
 0x189   : > { %v4022_v63 = vpop.permute.xlu2 %4021  ;;  %v2353_v9 = vsel %vm2347_vm10, %v4013_v6, %v4008_v61 }
 0x18a   : > { %3698 = vmatmul.msk.f32.vlgmr.msra.gmra.mxu2 %vm442_vm1, %v3691_v37  ;;  %v4023_v7 = vunpack.i.l.bf16 %v4022_v63  ;;  %v4024_v8 = vunpack.i.h.bf16 %v4022_v63 }
 0x18b   : > { %2273 = vmatpush.msra.mxu2 %v2132_v22  ;;  %3697 = vmatmul.msk.f32.vlgmr.msra.gmra.mxu1 %vm442_vm1, %v3691_v37  ;;  %v4002_v35 = vpop.permute.xlu1 %4001 }
 0x18c   : > { %3699 = vmatmul.msk.f32.vlgmr.msrb.gmra.mxu0 %vm442_vm1, %v3691_v37  ;;  %3700 = vmatmul.msk.f32.vlgmr.msrb.gmra.mxu3 %vm442_vm1, %v3691_v37  ;;  %v4004_v46 = vunpack.i.h.bf16 %v4002_v35  ;;  %v4003_v47 = vunpack.i.l.bf16 %v4002_v35  ;;  %v2352_v15 = vsel %vm2347_vm10, %v4023_v7, %v4014_v5  ;;  %v2354_v17 = vsel %vm2347_vm10, %v4024_v8, %v4023_v7 }
 0x18d   : > { %2253 = vmatpush.msra.mxu1 %v2134_v41  ;;  %2274 = vmatpush.msra.mxu2 %v2131_v42 }
 0x18e   : > { %2293 = vmatpush.msrb.mxu0 %v2130_v44  ;;  %2313 = vmatpush.msrb.mxu3 %v2136_v45  ;;  %v2368_v54 = vsel %vm2347_vm10, %v4003_v47, %v3993_v40  ;;  %v2366_v55 = vsel %vm2347_vm10, %v3994_v39, %v4004_v46  ;;  %v2369_v56 = vsel %vm2347_vm10, %v4004_v46, %v4003_v47  ;;  %v4810_v39 = vld [vmem:[%s5188_s3] sm:$0xff]  ;;  %v4815_v40 = vld [vmem:[%s5188_s3 + $0x10] sm:$0xff] }
 0x18f   : > { %2254 = vmatpush.msra.mxu1 %v2133_v48  ;;  %v1050_v42 = vperm.slane %v4810_v39, 1  ;;  %v1052_v44 = vperm.slane %v4815_v40, 1  ;;  %v835_v47 = vperm.slane %v4810_v39, 0  ;;  %v1271_v61 = vperm.slane %v4815_v40, 2 }
 0x190   : > { %2294 = vmatpush.msrb.mxu0 %v2129_v50  ;;  %2314 = vmatpush.msrb.mxu3 %v2135_v51  ;;  %v837_v50 = vperm.slane %v4815_v40, 0  ;;  %v4824_v51 = vld [vmem:[%s5188_s3 + $0x8] sm:$0xff] }
 0x192   : > { %3704 = vmatmul.msk.f32.vlgmr.msrb.gmra.mxu2 %vm668_vm3, %v3702_v52 }
 0x193   : > { %3703 = vmatmul.msk.f32.vlgmr.msrb.gmra.mxu1 %vm668_vm3, %v3702_v52  ;;  %2410 = vmatpush.msrb.mxu2 %v2367_v53  ;;  %v4017_v59 = vpop.permute.xlu1 %4016 }
 0x194   : > { %3705 = vmatmul.msk.f32.vlgmr.msra.gmra.mxu0 %vm668_vm3, %v3702_v52  ;;  %3706 = vmatmul.msk.f32.vlgmr.msra.gmra.mxu3 %vm668_vm3, %v3702_v52  ;;  %v4018_v1 = vunpack.i.l.bf16 %v4017_v59  ;;  %v4019_v3 = vunpack.i.h.bf16 %v4017_v59 }
 0x195   : > { %2390 = vmatpush.msrb.mxu1 %v2368_v54  ;;  %2430 = vmatpush.msra.mxu0 %v2366_v55  ;;  %v1051_v54 = vperm.slane %v4824_v51, 1 }
 0x196   : > { %2450 = vmatpush.msra.mxu3 %v2369_v56  ;;  %v2350_v10 = vsel %vm2347_vm10, %v4014_v5, %v4018_v1  ;;  %v2349_v13 = vsel %vm2347_vm10, %v4009_v60, %v4019_v3  ;;  %v2355_v14 = vsel %vm2347_vm10, %v4019_v3, %v4013_v6  ;;  %v2348_v34 = vsel %vm2347_vm10, %v4018_v1, %v4024_v8  ;;  %v4839_v1 = vld [vmem:[%s5188_s3 + $0x18] sm:$0xff] }
 0x197   : > { %v1269_v56 = vperm.slane %v4810_v39, 2 }
 0x19a   : > { %3708 = vmatmul.msk.f32.vlgmr.msra.gmra.mxu2 %vm442_vm1, %v3701_v0 }
 0x19b   : > { %2492 = vmatpush.msra.mxu2 %v2351_v21  ;;  %3707 = vmatmul.msk.f32.vlgmr.msra.gmra.mxu1 %vm442_vm1, %v3701_v0  ;;  %v1053_v21 = vperm.slane %v4839_v1, 1 }
 0x19c   : > { %3709 = vmatmul.msk.f32.vlgmr.msrb.gmra.mxu0 %vm442_vm1, %v3701_v0  ;;  %3710 = vmatmul.msk.f32.vlgmr.msrb.gmra.mxu3 %vm442_vm1, %v3701_v0  ;;  %v836_v0 = vperm.slane %v4824_v51, 0 }
 0x19d   : > { %2472 = vmatpush.msra.mxu1 %v2353_v9  ;;  %2493 = vmatpush.msra.mxu2 %v2350_v10  ;;  %v832_v33 = vpop.f32.mrf.mxu3 }
 0x19e   : > { %2512 = vmatpush.msrb.mxu0 %v2349_v13  ;;  %2532 = vmatpush.msrb.mxu3 %v2355_v14  ;;  %v833_v13 = vadd.f32 %v832_v33, %v749_v24  ;;  %v838_v14 = vperm.slane %v4839_v1, 0 }
 0x19f   : > { %2473 = vmatpush.msra.mxu1 %v2352_v15 }
 0x1a0   : > { %2513 = vmatpush.msrb.mxu0 %v2348_v34  ;;  %2533 = vmatpush.msrb.mxu3 %v2354_v17 }
 0x1a2   : > { %3714 = vmatmul.msk.f32.vlgmr.msrb.gmra.mxu2 %vm668_vm3, %v3712_v18 }
 0x1a3   : > { %3713 = vmatmul.msk.f32.vlgmr.msrb.gmra.mxu1 %vm668_vm3, %v3712_v18 }
 0x1a4   : > { %3715 = vmatmul.msk.f32.vlgmr.msra.gmra.mxu0 %vm668_vm3, %v3712_v18  ;;  %3716 = vmatmul.msk.f32.vlgmr.msra.gmra.mxu3 %vm668_vm3, %v3712_v18 }
 0x1a5   : > { %v772_v29 = vpop.f32.mrf.mxu1 }
 0x1a6   : > { %v812_v32 = vpop.f32.mrf.mxu0  ;;  %v773_v46 = vadd.f32 %v772_v29, %v689_v11 }
 0x1a7   : > { %v813_v48 = vadd.f32 %v812_v32, %v729_v12  ;;  %v1270_v12 = vperm.slane %v4824_v51, 2  ;;  %v5199_v32 = vperm.slane %v4839_v1, 2 }
 0x1a8   : > { %v839_v62 = vmul.f32 %v835_v47, %v773_v46 }
 0x1a9   : > { %v841_v6 = vmul.f32 %v837_v50, %v813_v48 }
 0x1aa   : > { %3718 = vmatmul.msk.f32.vlgmr.msra.gmra.mxu2 %vm442_vm1, %v3711_v28 }
 0x1ab   : > { %3717 = vmatmul.msk.f32.vlgmr.msra.gmra.mxu1 %vm442_vm1, %v3711_v28 }
 0x1ac   : > { %3719 = vmatmul.msk.f32.vlgmr.msrb.gmra.mxu0 %vm442_vm1, %v3711_v28  ;;  %3720 = vmatmul.msk.f32.vlgmr.msrb.gmra.mxu3 %vm442_vm1, %v3711_v28  ;;  %v792_v36 = vpop.f32.mrf.mxu2 }
 0x1ad   : > { %v904_v37 = vpop.f32.mrf.mxu1  ;;  %v793_v63 = vadd.f32 %v792_v36, %v709_v25  ;;  %v842_v36 = vmul.f32 %v838_v14, %v833_v13 }
 0x1ae   : > { %v944_v38 = vpop.f32.mrf.mxu0 }
 0x1af   : > { %v840_v17 = vmul.f32 %v836_v0, %v793_v63  ;;  %v5197_v63 = vperm.slane %v4839_v1, 3 }
 0x1b4   : > { %v924_v19 = vpop.f32.mrf.mxu2 }
 0x1b5   : > { %v964_v23 = vpop.f32.mrf.mxu3 }
 0x1b8   : > { %v987_v26 = vpop.f32.mrf.mxu1 }
 0x1b9   : > { %v1027_v27 = vpop.f32.mrf.mxu0  ;;  %v988_v41 = vadd.f32 %v987_v26, %v904_v37 }
 0x1ba   : > { %v1028_v43 = vadd.f32 %v1027_v27, %v944_v38 }
 0x1bb   : > { %v1054_v52 = vmul.f32 %v1050_v42, %v988_v41 }
 0x1bc   : > { %v1007_v22 = vpop.f32.mrf.mxu2  ;;  %v1056_v59 = vmul.f32 %v1052_v44, %v1028_v43  ;;  %v1490_v43 = vperm.slane %v4815_v40, 3 }
 0x1bd   : > { %v1008_v53 = vadd.f32 %v1007_v22, %v924_v19  ;;  %v1058_v9 = vadd.f32 %v1054_v52, %v839_v62 }
 0x1be   : > { %v1060_v15 = vadd.f32 %v1056_v59, %v841_v6 }
 0x1bf   : > { %v1047_v30 = vpop.f32.mrf.mxu3  ;;  %v1055_v10 = vmul.f32 %v1051_v54, %v1008_v53  ;;  %v5198_v53 = vperm.slane %v4824_v51, 3 }
 0x1c0   : > { %v1123_v31 = vpop.f32.mrf.mxu1  ;;  %v1048_v7 = vadd.f32 %v1047_v30, %v964_v23 }
 0x1c1   : > { %v1163_v35 = vpop.f32.mrf.mxu0  ;;  %v1059_v28 = vadd.f32 %v1055_v10, %v840_v17 }
 0x1c2   : > { %v1057_v25 = vmul.f32 %v1053_v21, %v1048_v7 }
 0x1c4   : > { %v1143_v45 = vpop.f32.mrf.mxu2  ;;  %v1061_v26 = vadd.f32 %v1057_v25, %v842_v36 }
 0x1c7   : > { %v1183_v55 = vpop.f32.mrf.mxu3 }
 0x1c8   : > { %v1206_v60 = vpop.f32.mrf.mxu1 }
 0x1c9   : > { %v1207_v3 = vadd.f32 %v1206_v60, %v1123_v31  ;;  %v1246_v5 = vpop.f32.mrf.mxu0 }
 0x1ca   : > { %v1247_v8 = vadd.f32 %v1246_v5, %v1163_v35  ;;  %v1488_v35 = vperm.slane %v4810_v39, 3 }
 0x1cb   : > { %v1273_v11 = vmul.f32 %v1269_v56, %v1207_v3 }
 0x1cc   : > { %v1275_v16 = vmul.f32 %v1271_v61, %v1247_v8  ;;  %v1226_v34 = vpop.f32.mrf.mxu2 }
 0x1cd   : > { %v1277_v18 = vadd.f32 %v1273_v11, %v1058_v9  ;;  %v1227_v20 = vadd.f32 %v1226_v34, %v1143_v45 }
 0x1ce   : > { %v1279_v29 = vadd.f32 %v1275_v16, %v1060_v15 }
 0x1cf   : > { %v1274_v24 = vmul.f32 %v1270_v12, %v1227_v20  ;;  %v1266_v33 = vpop.f32.mrf.mxu3 }
 0x1d0   : > { %v1267_v37 = vadd.f32 %v1266_v33, %v1183_v55  ;;  %v1342_v38 = vpop.f32.mrf.mxu1 }
 0x1d1   : > { %v1278_v19 = vadd.f32 %v1274_v24, %v1059_v28  ;;  %v1382_v23 = vpop.f32.mrf.mxu0 }
 0x1d2   : > { %v1276_v27 = vmul.f32 %v5199_v32, %v1267_v37 }
 0x1d4   : > { %v1280_v22 = vadd.f32 %v1276_v27, %v1061_v26  ;;  %v1362_v30 = vpop.f32.mrf.mxu2 }
 0x1d7   : > { %v1402_v31 = vpop.f32.mrf.mxu3 }
 0x1d8   : > { %v1425_v41 = vpop.f32.mrf.mxu1 }
 0x1d9   : > { %v1426_v45 = vadd.f32 %v1425_v41, %v1342_v38  ;;  %v1465_v46 = vpop.f32.mrf.mxu0 }
 0x1da   : > { %v1466_v48 = vadd.f32 %v1465_v46, %v1382_v23 }
 0x1db   : > { %v1492_v52 = vmul.f32 %v1488_v35, %v1426_v45 }
 0x1dc   : > { %v1494_v55 = vmul.f32 %v1490_v43, %v1466_v48  ;;  %v1445_v59 = vpop.f32.mrf.mxu2 }
 0x1dd   : > { %v1446_v60 = vadd.f32 %v1445_v59, %v1362_v30  ;;  %v1496_v62 = vadd.f32 %v1492_v52, %v1277_v18 }
 0x1de   : > { %v1498_v3 = vadd.f32 %v1494_v55, %v1279_v29 }
 0x1df   : > { %v1493_v5 = vmul.f32 %v5198_v53, %v1446_v60  ;;  %v1485_v6 = vpop.f32.mrf.mxu3 }
 0x1e0   : > { %v1486_v7 = vadd.f32 %v1485_v6, %v1402_v31  ;;  %v1524_v8 = vpop.f32.mrf.mxu1 }
 0x1e1   : > { %v1564_v9 = vpop.f32.mrf.mxu0  ;;  %v1497_v10 = vadd.f32 %v1493_v5, %v1278_v19 }
 0x1e2   : > { %v1495_v11 = vmul.f32 %v5197_v63, %v1486_v7  ;;  %v5200_v63 = vperm.slane %v4824_v51, 5 }
 0x1e4   : > { %v1499_v13 = vadd.f32 %v1495_v11, %v1280_v22 }
 0x1e5   : > { %v1544_v15 = vpop.f32.mrf.mxu2 }
 0x1e7   : > { %v1584_v16 = vpop.f32.mrf.mxu3 }
 0x1e8   : > { %v1607_v34 = vpop.f32.mrf.mxu1 }
 0x1e9   : > { %v1608_v17 = vadd.f32 %v1607_v34, %v1524_v8  ;;  %v1647_v18 = vpop.f32.mrf.mxu0 }
 0x1ea   : > { %v1648_v20 = vadd.f32 %v1647_v18, %v1564_v9 }
 0x1eb   : > { %v1670_v25 = vadd.f32 %v1608_v17, %v1496_v62 }
 0x1ec   : > { %v1672_v29 = vadd.f32 %v1648_v20, %v1498_v3  ;;  %v2100_v20 = vperm.slane %v4810_v39, 6 }
 0x1ed   : > { %v1627_v28 = vpop.f32.mrf.mxu2 }
 0x1ee   : > { %v1628_v24 = vadd.f32 %v1627_v28, %v1544_v15 }
 0x1ef   : > { %v1667_v33 = vpop.f32.mrf.mxu3 }
 0x1f0   : > { %v4875_v36 = vadd.f32 %v1628_v24, %v1497_v10  ;;  %v1668_v37 = vadd.f32 %v1667_v33, %v1584_v16  ;;  %v1735_v38 = vpop.f32.mrf.mxu1  ;;  %v1883_v16 = vperm.slane %v4815_v40, 5  ;;  %v5203_v33 = vperm.slane %v4815_v40, 6 }
 0x1f1   : > { %v1775_v19 = vpop.f32.mrf.mxu0 }
 0x1f2   : > { %v4877_v23 = vadd.f32 %v1668_v37, %v1499_v13  ;;  %v1881_v13 = vperm.slane %v4810_v39, 5 }
 0x1f5   : > { %v1755_v26 = vpop.f32.mrf.mxu2 }
 0x1f7   : > { %v1795_v27 = vpop.f32.mrf.mxu3 }
 0x1f8   : > { %v1818_v22 = vpop.f32.mrf.mxu1 }
 0x1f9   : > { %v1858_v30 = vpop.f32.mrf.mxu0  ;;  %v1819_v11 = vadd.f32 %v1818_v22, %v1735_v38 }
 0x1fa   : > { %v1859_v15 = vadd.f32 %v1858_v30, %v1775_v19  ;;  %v5202_v19 = vperm.slane %v4810_v39, 7 }
 0x1fb   : > { %v1885_v37 = vmul.f32 %v1881_v13, %v1819_v11 }
 0x1fc   : > { %v1887_v38 = vmul.f32 %v1883_v16, %v1859_v15 }
 0x1fd   : > { %v1838_v31 = vpop.f32.mrf.mxu2 }
 0x1fe   : > { %v1839_v30 = vadd.f32 %v1838_v31, %v1755_v26  ;;  %v5206_v26 = vperm.slane %v4839_v1, 6  ;;  %v1889_v31 = vadd.f32 %v1885_v37, %v1670_v25  ;;  %v5205_v25 = vperm.slane %v4824_v51, 7 }
 0x1ff   : > { %v1878_v41 = vpop.f32.mrf.mxu3  ;;  %v5204_v37 = vperm.slane %v4839_v1, 7 }
 0x200   : > { %v1954_v45 = vpop.f32.mrf.mxu1 }
 0x201   : > { %v1994_v46 = vpop.f32.mrf.mxu0 }
 0x205   : > { %v1974_v48 = vpop.f32.mrf.mxu2 }
 0x207   : > { %v2014_v52 = vpop.f32.mrf.mxu3 }
 0x208   : > { %v2037_v55 = vpop.f32.mrf.mxu1 }
 0x209   : > { %v2077_v59 = vpop.f32.mrf.mxu0  ;;  %v2038_v18 = vadd.f32 %v2037_v55, %v1954_v45  ;;  %v5201_v45 = vperm.slane %v4815_v40, 7  ;;  %v1879_v55 = vadd.f32 %v1878_v41, %v1795_v27 }
 0x20a   : > { %v2078_v24 = vadd.f32 %v2077_v59, %v1994_v46  ;;  %v1884_v46 = vperm.slane %v4839_v1, 5 }
 0x20b   : > { %v2104_v59 = vmul.f32 %v2100_v20, %v2038_v18  ;;  %v1886_v18 = vmul.f32 %v5200_v63, %v1839_v30 }
 0x20c   : > { %v2106_v11 = vmul.f32 %v5203_v33, %v2078_v24 }
 0x20d   : > { %v2057_v60 = vpop.f32.mrf.mxu2  ;;  %v2108_v24 = vadd.f32 %v2104_v59, %v1889_v31  ;;  %v1890_v33 = vadd.f32 %v1886_v18, %v4875_v36 }
 0x20e   : > { %v2058_v15 = vadd.f32 %v2057_v60, %v1974_v48 }
 0x20f   : > { %v2097_v62 = vpop.f32.mrf.mxu3 }
 0x210   : > { %v2173_v3 = vpop.f32.mrf.mxu1 }
 0x211   : > { %v2213_v5 = vpop.f32.mrf.mxu0 }
 0x215   : > { %v2193_v6 = vpop.f32.mrf.mxu2 }
 0x217   : > { %v2233_v7 = vpop.f32.mrf.mxu3 }
 0x218   : > { %v2256_v8 = vpop.f32.mrf.mxu1 }
 0x219   : > { %v2296_v9 = vpop.f32.mrf.mxu0  ;;  %v2257_v22 = vadd.f32 %v2256_v8, %v2173_v3  ;;  %v2101_v3 = vperm.slane %v4824_v51, 6  ;;  %v1891_v8 = vadd.f32 %v1887_v38, %v1672_v29 }
 0x21a   : > { %v2297_v53 = vadd.f32 %v2296_v9, %v2213_v5  ;;  %v2098_v5 = vadd.f32 %v2097_v62, %v2014_v52  ;;  %v4902_v9 = vld [vmem:[%s5188_s3 + $0x20] ss:$0 sm:$0xff]  ;;  %v4912_v52 = vld [vmem:[%s5188_s3 + $0x30] ss:$0 sm:$0xff]  ;;  %v1888_v62 = vmul.f32 %v1884_v46, %v1879_v55 }
 0x21b   : > { %v2323_v27 = vmul.f32 %v5202_v19, %v2257_v22  ;;  %v2110_v30 = vadd.f32 %v2106_v11, %v1891_v8  ;;  %v4929_v11 = vld [vmem:[%s5188_s3 + $0x28] ss:$0 sm:$0xff] }
 0x21c   : > { %v2325_v48 = vmul.f32 %v5201_v45, %v2297_v53  ;;  %v2105_v53 = vmul.f32 %v2101_v3, %v2058_v15  ;;  %v2107_v63 = vmul.f32 %v5206_v26, %v2098_v5  ;;  %v2553_v15 = vpop.permute.xlu0 %2552 }
 0x21d   : > { %v2276_v10 = vpop.f32.mrf.mxu2  ;;  %v2327_v45 = vadd.f32 %v2323_v27, %v2108_v24  ;;  %v4937_v27 = vld [vmem:[%s5188_s3 + $0x38] ss:$0 sm:$0xff] }
 0x21e   : > { %v2277_v60 = vadd.f32 %v2276_v10, %v2193_v6  ;;  %v2329_v55 = vadd.f32 %v2325_v48, %v2110_v30  ;;  %v2109_v31 = vadd.f32 %v2105_v53, %v1890_v33 }
 0x21f   : > { %v2316_v34 = vpop.f32.mrf.mxu3 }
 0x220   : > { %v2392_v17 = vpop.f32.mrf.mxu1  ;;  %v2317_v6 = vadd.f32 %v2316_v34, %v2233_v7  ;;  %v2324_v59 = vmul.f32 %v5205_v25, %v2277_v60  ;;  %v1892_v7 = vadd.f32 %v1888_v62, %v4877_v23 }
 0x221   : > { %v2432_v28 = vpop.f32.mrf.mxu0 }
 0x222   : > { %v2326_v36 = vmul.f32 %v5204_v37, %v2317_v6  ;;  %v2111_v18 = vadd.f32 %v2107_v63, %v1892_v7  ;;  %v2328_v60 = vadd.f32 %v2324_v59, %v2109_v31  ;;  %v616_v31 = vld [vmem:[%s5195_s10] sm:$0xff] }
 0x225   : > { %v2412_v32 = vpop.f32.mrf.mxu2 }
 0x227   : > { %v2452_v41 = vpop.f32.mrf.mxu3 }
 0x228   : > { %v2475_v29 = vpop.f32.mrf.mxu1 }
 0x229   : > { %v2476_v38 = vadd.f32 %v2475_v29, %v2392_v17  ;;  %v2515_v22 = vpop.f32.mrf.mxu0 }
 0x22a   : > { %v2516_v10 = vadd.f32 %v2515_v22, %v2432_v28 }
 0x22b   : > { %v2542_v19 = vmul.f32 %v4902_v9, %v2476_v38 }
 0x22c   : > { %v2544_v17 = vmul.f32 %v4912_v52, %v2516_v10 }
 0x22d   : > { %v2546_v34 = vadd.f32 %v2542_v19, %v2327_v45  ;;  %v2495_v28 = vpop.f32.mrf.mxu2  ;;  %v2330_v45 = vadd.f32 %v2326_v36, %v2111_v18  ;;  %v2584_v18 = vld [vmem:[%s5192_s7] sm:$0xff] }
 0x22e   : > { %v2548_v8 = vadd.f32 %v2544_v17, %v2329_v55  ;;  %v2496_v5 = vadd.f32 %v2495_v28, %v2412_v32 }
 0x22f   : > { %v2535_v48 = vpop.f32.mrf.mxu3  ;;  %v2555_v23 = vadd.f32 %v2553_v15, %v2546_v34 }
 0x230   : > { %v2543_v29 = vmul.f32 %v4929_v11, %v2496_v5  ;;  %v2536_v19 = vadd.f32 %v2535_v48, %v2452_v41  ;;  %v2557_v33 = vadd.f32 %v2553_v15, %v2548_v8 }
 0x231   : > { %v2563_v22 = vmul.f32 0.01, %v2555_v23  ;;  %vm2559_vm11 = vcmp.ge.f32.partialorder %v2555_v23, 0.0 }
 0x232   : > { %v2547_v62 = vadd.f32 %v2543_v29, %v2328_v60  ;;  %v2545_v24 = vmul.f32 %v4937_v27, %v2536_v19  ;;  %v2565_v53 = vmul.f32 0.01, %v2557_v33  ;;  %vm2561_vm13 = vcmp.ge.f32.partialorder %v2557_v33, 0.0  ;;  %v3725_v19 = vld [vmem:[%s5192_s7 + $0x8] sm:$0xff] }
 0x233   : > { %v4941_v63 = vsel %vm2559_vm11, %v2555_v23, %v2563_v22 }
 0x234   : > { %v2556_v38 = vadd.f32 %v2553_v15, %v2547_v62  ;;  %v2549_v32 = vadd.f32 %v2545_v24, %v2330_v45  ;;  %v4947_v59 = vsel %vm2561_vm13, %v2557_v33, %v2565_v53 }
 0x236   : > { %vm2560_vm12 = vcmp.ge.f32.partialorder %v2556_v38, 0.0  ;;  %v2564_v30 = vmul.f32 0.01, %v2556_v38  ;;  %v2558_v6 = vadd.f32 %v2553_v15, %v2549_v32  ;;  %v2571_v15 = vld [vmem:[%s5193_s8] sm:$0xff] }
 0x238   : > { %v4943_v10 = vsel %vm2560_vm12, %v2556_v38, %v2564_v30  ;;  %vm2562_vm14 = vcmp.ge.f32.partialorder %v2558_v6, 0.0  ;;  %v2566_v41 = vmul.f32 0.01, %v2558_v6 }
 0x239   : > { %v4046_v55 = vpack.i.bf16 %v4943_v10, %v4941_v63  ;;  %v4076_v34 = vpack.i.bf16 %v4947_v59, %v4943_v10 }
 0x23a   : > { %v4949_v17 = vsel %vm2562_vm14, %v2558_v6, %v2566_v41 }
 0x23b   : > { %4047 = vrot.lane.b32.xlu0 %v4046_v55, %s4121_s12  ;;  %4027 = vrot.lane.b32.xlu1 %v4046_v55, %s4119_s29  ;;  %v4036_v7 = vpack.i.bf16 %v4949_v17, %v4947_v59  ;;  %v4091_v28 = vpack.i.bf16 %v4949_v17, %v4941_v63 }
 0x23d   : > { %4037 = vrot.lane.b32.xlu2 %v4036_v7, %s4119_s29 }
 0x243   : > { %4062 = vrot.lane.b32.xlu0 %v4036_v7, %s4122_s14  ;;  %4032 = vrot.lane.b32.xlu1 %v4046_v55, %s4120_s30 }
 0x245   : > { %4042 = vrot.lane.b32.xlu2 %v4036_v7, %s4120_s30 }
 0x24b   : > { %4077 = vrot.lane.b32.xlu0 %v4076_v34, %s4124_s16  ;;  %4052 = vrot.lane.b32.xlu1 %v4036_v7, %s4121_s12 }
 0x24d   : > { %4057 = vrot.lane.b32.xlu2 %v4046_v55, %s4122_s14 }
 0x253   : > { %4092 = vrot.lane.b32.xlu0 %v4091_v28, %s4125_s19  ;;  %4067 = vrot.lane.b32.xlu1 %v4076_v34, %s4123_s15 }
 0x255   : > { %4072 = vrot.lane.b32.xlu2 %v4091_v28, %s4123_s15 }
 0x25b   : > { %3498 = vperm.xlu0 %4025, %v2571_v15   ;;  %4082 = vrot.lane.b32.xlu1 %v4091_v28, %s4124_s16 }
 0x25d   : > { %4087 = vrot.lane.b32.xlu2 %v4076_v34, %s4125_s19 }
 0x263   : > { %4097 = vrot.lane.b32.xlu1 %v4076_v34, %s4126_s18 }
 0x265   : > { %4102 = vrot.lane.b32.xlu2 %v4091_v28, %s4126_s18  ;;  %s413_s18 = scalar_lea.vmem %s5196_s11, %s3614_s13 }
 0x26b   : > { %619 = vperm.xlu1 %4106, %v616_v31  }
 0x297   : > { %v4038_v36 = vpop.permute.xlu2 %4037 }
 0x298   : > { %v4040_v8 = vunpack.i.h.bf16 %v4038_v36  ;;  %v4039_v5 = vunpack.i.l.bf16 %v4038_v36 }
 0x29a   : > { %v2580_v48 = vsel %vm645_vm2, %v4039_v5, %v4040_v8 }
 0x29b   : > { %2663 = vmatpush.msra.mxu3 %v2580_v48 }
 0x29c   : > { %3724 = vmatmul.msk.f32.vlgmr.msra.gmra.mxu3 %vm668_vm3, %v2584_v18 }
 0x29f   : > { %v4043_v60 = vpop.permute.xlu2 %4042 }
 0x2a0   : > { %v4045_v29 = vunpack.i.h.bf16 %v4043_v60  ;;  %v4044_v23 = vunpack.i.l.bf16 %v4043_v60 }
 0x2a2   : > { %v2680_v45 = vsel %vm859_vm4, %v4044_v23, %v4045_v29 }
 0x2a3   : > { %2764 = vmatpush.msrb.mxu3 %v2680_v45 }
 0x2a4   : > { %3729 = vmatmul.msk.f32.vlgmr.msrb.gmra.mxu3 %vm668_vm3, %v3725_v19 }
 0x2a7   : > { %v4058_v53 = vpop.permute.xlu2 %4057 }
 0x2a8   : > { %v4060_v28 = vunpack.i.h.bf16 %v4058_v53  ;;  %v4059_v15 = vunpack.i.l.bf16 %v4058_v53 }
 0x2aa   : > { %v2892_v48 = vsel %vm1297_vm6, %v4059_v15, %v4060_v28 }
 0x2ad   : > { %v4028_v62 = vpop.permute.xlu1 %4027  ;;  %v4048_v30 = vpop.permute.xlu0 %4047 }
 0x2ae   : > { %v4030_v33 = vunpack.i.h.bf16 %v4028_v62  ;;  %v4029_v24 = vunpack.i.l.bf16 %v4028_v62  ;;  %v4050_v7 = vunpack.i.h.bf16 %v4048_v30  ;;  %v4049_v34 = vunpack.i.l.bf16 %v4048_v30  ;;  %v3730_v62 = vld [vmem:[%s5192_s7 + $0x10] sm:$0xff] }
 0x2b0   : > { %v2583_v38 = vsel %vm645_vm2, %v4040_v8, %v4029_v24  ;;  %v2582_v22 = vsel %vm645_vm2, %v4029_v24, %v4030_v33  ;;  %v2581_v32 = vsel %vm645_vm2, %v4030_v33, %v4039_v5  ;;  %v2787_v5 = vsel %vm1078_vm5, %v4049_v34, %v4050_v7 }
 0x2b1   : > { %2603 = vmatpush.msrb.mxu1 %v2583_v38  ;;  %2623 = vmatpush.msrb.mxu2 %v2582_v22 }
 0x2b2   : > { %2643 = vmatpush.msra.mxu0 %v2581_v32  ;;  %3721 = vmatmul.msk.f32.vlgmr.msrb.gmra.mxu1 %vm668_vm3, %v2584_v18  ;;  %v4073_v32 = vpop.permute.xlu2 %4072 }
 0x2b3   : > { %3722 = vmatmul.msk.f32.vlgmr.msrb.gmra.mxu2 %vm668_vm3, %v2584_v18  ;;  %3723 = vmatmul.msk.f32.vlgmr.msra.gmra.mxu0 %vm668_vm3, %v2584_v18 }
 0x2b5   : > { %v4033_v6 = vpop.permute.xlu1 %4032  ;;  %v4063_v18 = vpop.permute.xlu0 %4062 }
 0x2b6   : > { %v4035_v41 = vunpack.i.h.bf16 %v4033_v6  ;;  %v4034_v55 = vunpack.i.l.bf16 %v4033_v6  ;;  %v4064_v33 = vunpack.i.l.bf16 %v4063_v18 }
 0x2b8   : > { %v2683_v31 = vsel %vm859_vm4, %v4045_v29, %v4034_v55  ;;  %v2682_v36 = vsel %vm859_vm4, %v4034_v55, %v4035_v41  ;;  %v2681_v8 = vsel %vm859_vm4, %v4035_v41, %v4044_v23  ;;  %v4065_v23 = vunpack.i.h.bf16 %v4063_v18  ;;  %v3740_v18 = vld [vmem:[%s5192_s7 + $0x20] sm:$0xff] }
 0x2b9   : > { %2704 = vmatpush.msra.mxu1 %v2683_v31  ;;  %2724 = vmatpush.msra.mxu2 %v2682_v36  ;;  %v2891_v30 = vsel %vm1297_vm6, %v4060_v28, %v4064_v33  ;;  %v4075_v28 = vunpack.i.h.bf16 %v4073_v32 }
 0x2ba   : > { %2744 = vmatpush.msrb.mxu0 %v2681_v8  ;;  %3726 = vmatmul.msk.f32.vlgmr.msra.gmra.mxu1 %vm668_vm3, %v3725_v19  ;;  %v2893_v22 = vsel %vm1297_vm6, %v4065_v23, %v4059_v15  ;;  %v2890_v53 = vsel %vm1297_vm6, %v4064_v33, %v4065_v23  ;;  %v4088_v23 = vpop.permute.xlu2 %4087 }
 0x2bb   : > { %3727 = vmatmul.msk.f32.vlgmr.msra.gmra.mxu2 %vm668_vm3, %v3725_v19  ;;  %3728 = vmatmul.msk.f32.vlgmr.msrb.gmra.mxu0 %vm668_vm3, %v3725_v19 }
 0x2bc   : > { %2829 = vmatpush.msrb.mxu2 %v2787_v5 }
 0x2bd   : > { %v4053_v60 = vpop.permute.xlu1 %4052  ;;  %v4078_v31 = vpop.permute.xlu0 %4077 }
 0x2be   : > { %2934 = vmatpush.msra.mxu2 %v2892_v48  ;;  %v4055_v29 = vunpack.i.h.bf16 %v4053_v60  ;;  %v4054_v45 = vunpack.i.l.bf16 %v4053_v60  ;;  %v4079_v5 = vunpack.i.l.bf16 %v4078_v31  ;;  %v4080_v48 = vunpack.i.h.bf16 %v4078_v31 }
 0x2c0   : > { %v2788_v19 = vsel %vm1078_vm5, %v4055_v29, %v4049_v34  ;;  %v2786_v24 = vsel %vm1078_vm5, %v4050_v7, %v4054_v45  ;;  %v2785_v38 = vsel %vm1078_vm5, %v4054_v45, %v4055_v29  ;;  %v4074_v7 = vunpack.i.l.bf16 %v4073_v32  ;;  %v3735_v34 = vld [vmem:[%s5192_s7 + $0x18] sm:$0xff] }
 0x2c1   : > { %2809 = vmatpush.msrb.mxu1 %v2788_v19  ;;  %2849 = vmatpush.msra.mxu0 %v2786_v24  ;;  %v3190_v33 = vsel %vm1909_vm8, %v4079_v5, %v4080_v48  ;;  %v3745_v24 = vld [vmem:[%s5192_s7 + $0x28] sm:$0xff] }
 0x2c2   : > { %2869 = vmatpush.msra.mxu3 %v2785_v38  ;;  %3731 = vmatmul.msk.f32.vlgmr.msrb.gmra.mxu1 %vm668_vm3, %v3730_v62  ;;  %v4090_v38 = vunpack.i.h.bf16 %v4088_v23 }
 0x2c3   : > { %3732 = vmatmul.msk.f32.vlgmr.msrb.gmra.mxu2 %vm668_vm3, %v3730_v62  ;;  %3733 = vmatmul.msk.f32.vlgmr.msra.gmra.mxu0 %vm668_vm3, %v3730_v62 }
 0x2c4   : > { %3734 = vmatmul.msk.f32.vlgmr.msra.gmra.mxu3 %vm668_vm3, %v3730_v62  ;;  %2914 = vmatpush.msra.mxu1 %v2893_v22  ;;  %v4089_v22 = vunpack.i.l.bf16 %v4088_v23 }
 0x2c5   : > { %2954 = vmatpush.msrb.mxu0 %v2891_v30  ;;  %2974 = vmatpush.msrb.mxu3 %v2890_v53  ;;  %v4068_v6 = vpop.permute.xlu1 %4067  ;;  %v4093_v62 = vpop.permute.xlu0 %4092 }
 0x2c6   : > { %3027 = vmatpush.msrb.mxu2 %v4943_v10  ;;  %3007 = vmatpush.msrb.mxu1 %v4941_v63  ;;  %v4070_v41 = vunpack.i.h.bf16 %v4068_v6  ;;  %v4069_v55 = vunpack.i.l.bf16 %v4068_v6  ;;  %v4094_v19 = vunpack.i.l.bf16 %v4093_v62  ;;  %v4095_v32 = vunpack.i.h.bf16 %v4093_v62 }
 0x2c7   : > { %3047 = vmatpush.msra.mxu0 %v4947_v59  ;;  %3067 = vmatpush.msra.mxu3 %v4949_v17  ;;  %v3087_v59 = vsel %vm1690_vm7, %v4075_v28, %v4074_v7  ;;  %v3295_v6 = vsel %vm2128_vm9, %v4089_v22, %v4090_v38 }
 0x2c8   : > { %v3086_v15 = vsel %vm1690_vm7, %v4074_v7, %v4069_v55  ;;  %v3085_v63 = vsel %vm1690_vm7, %v4069_v55, %v4070_v41  ;;  %v3084_v10 = vsel %vm1690_vm7, %v4070_v41, %v4075_v28  ;;  %v3296_v30 = vsel %vm2128_vm9, %v4094_v19, %v4089_v22  ;;  %v4103_v7 = vpop.permute.xlu2 %4102  ;;  %v3750_v28 = vld [vmem:[%s5192_s7 + $0x30] sm:$0xff] }
 0x2c9   : > { %v3294_v41 = vsel %vm2128_vm9, %v4090_v38, %v4095_v32  ;;  %v3297_v55 = vsel %vm2128_vm9, %v4095_v32, %v4094_v19  ;;  %v4105_v31 = vunpack.i.h.bf16 %v4103_v7 }
 0x2ca   : > { %3736 = vmatmul.msk.f32.vlgmr.msra.gmra.mxu1 %vm668_vm3, %v3735_v34 }
 0x2cb   : > { %3737 = vmatmul.msk.f32.vlgmr.msra.gmra.mxu2 %vm668_vm3, %v3735_v34  ;;  %3738 = vmatmul.msk.f32.vlgmr.msrb.gmra.mxu0 %vm668_vm3, %v3735_v34 }
 0x2cc   : > { %3739 = vmatmul.msk.f32.vlgmr.msrb.gmra.mxu3 %vm668_vm3, %v3735_v34  ;;  %3108 = vmatpush.msra.mxu1 %v3086_v15 }
 0x2cd   : > { %3128 = vmatpush.msra.mxu2 %v3085_v63  ;;  %3148 = vmatpush.msrb.mxu0 %v3084_v10  ;;  %v4083_v17 = vpop.permute.xlu1 %4082  ;;  %v4104_v63 = vunpack.i.l.bf16 %v4103_v7 }
 0x2ce   : > { %3168 = vmatpush.msrb.mxu3 %v3087_v59  ;;  %v4085_v36 = vunpack.i.h.bf16 %v4083_v17  ;;  %v4084_v8 = vunpack.i.l.bf16 %v4083_v17 }
 0x2d0   : > { %v3191_v60 = vsel %vm1909_vm8, %v4084_v8, %v4079_v5  ;;  %v3189_v29 = vsel %vm1909_vm8, %v4080_v48, %v4085_v36  ;;  %v3192_v45 = vsel %vm1909_vm8, %v4085_v36, %v4084_v8  ;;  %v3402_v36 = vsel %vm2347_vm10, %v4105_v31, %v4104_v63  ;;  %v3755_v8 = vld [vmem:[%s5192_s7 + $0x38] sm:$0xff]  ;;  %v3760_v5 = vld [vmem:[%s5192_s7 + $0x40] sm:$0xff] }
 0x2d2   : > { %3741 = vmatmul.msk.f32.vlgmr.msrb.gmra.mxu1 %vm668_vm3, %v3740_v18 }
 0x2d3   : > { %3742 = vmatmul.msk.f32.vlgmr.msrb.gmra.mxu2 %vm668_vm3, %v3740_v18  ;;  %3743 = vmatmul.msk.f32.vlgmr.msra.gmra.mxu0 %vm668_vm3, %v3740_v18 }
 0x2d4   : > { %3744 = vmatmul.msk.f32.vlgmr.msra.gmra.mxu3 %vm668_vm3, %v3740_v18  ;;  %3213 = vmatpush.msrb.mxu1 %v3191_v60 }
 0x2d5   : > { %3233 = vmatpush.msrb.mxu2 %v3190_v33  ;;  %3253 = vmatpush.msra.mxu0 %v3189_v29  ;;  %v4098_v53 = vpop.permute.xlu1 %4097 }
 0x2d6   : > { %3273 = vmatpush.msra.mxu3 %v3192_v45  ;;  %v4099_v34 = vunpack.i.l.bf16 %v4098_v53  ;;  %v4100_v15 = vunpack.i.h.bf16 %v4098_v53 }
 0x2d8   : > { %v3401_v10 = vsel %vm2347_vm10, %v4104_v63, %v4099_v34  ;;  %v3400_v59 = vsel %vm2347_vm10, %v4099_v34, %v4100_v15  ;;  %v3399_v17 = vsel %vm2347_vm10, %v4100_v15, %v4105_v31 }
 0x2da   : > { %3746 = vmatmul.msk.f32.vlgmr.msra.gmra.mxu1 %vm668_vm3, %v3745_v24 }
 0x2db   : > { %3747 = vmatmul.msk.f32.vlgmr.msra.gmra.mxu2 %vm668_vm3, %v3745_v24  ;;  %3748 = vmatmul.msk.f32.vlgmr.msrb.gmra.mxu0 %vm668_vm3, %v3745_v24 }
 0x2dc   : > { %3749 = vmatmul.msk.f32.vlgmr.msrb.gmra.mxu3 %vm668_vm3, %v3745_v24  ;;  %3318 = vmatpush.msra.mxu1 %v3296_v30 }
 0x2dd   : > { %3338 = vmatpush.msra.mxu2 %v3295_v6  ;;  %3358 = vmatpush.msrb.mxu0 %v3294_v41 }
 0x2de   : > { %3378 = vmatpush.msrb.mxu3 %v3297_v55 }
 0x2e2   : > { %3751 = vmatmul.msk.f32.vlgmr.msrb.gmra.mxu1 %vm668_vm3, %v3750_v28 }
 0x2e3   : > { %3752 = vmatmul.msk.f32.vlgmr.msrb.gmra.mxu2 %vm668_vm3, %v3750_v28  ;;  %3753 = vmatmul.msk.f32.vlgmr.msra.gmra.mxu0 %vm668_vm3, %v3750_v28 }
 0x2e4   : > { %3754 = vmatmul.msk.f32.vlgmr.msra.gmra.mxu3 %vm668_vm3, %v3750_v28  ;;  %3423 = vmatpush.msrb.mxu1 %v3401_v10 }
 0x2e5   : > { %3443 = vmatpush.msrb.mxu2 %v3400_v59  ;;  %3463 = vmatpush.msra.mxu0 %v3399_v17 }
 0x2e6   : > { %3483 = vmatpush.msra.mxu3 %v3402_v36 }
 0x2ea   : > { %3756 = vmatmul.msk.f32.vlgmr.msra.gmra.mxu1 %vm668_vm3, %v3755_v8 }
 0x2eb   : > { %3757 = vmatmul.msk.f32.vlgmr.msra.gmra.mxu2 %vm668_vm3, %v3755_v8  ;;  %3758 = vmatmul.msk.f32.vlgmr.msrb.gmra.mxu0 %vm668_vm3, %v3755_v8 }
 0x2ec   : > { %3759 = vmatmul.msk.f32.vlgmr.msrb.gmra.mxu3 %vm668_vm3, %v3755_v8 }
 0x2f2   : > { %3761 = vmatmul.msk.f32.vlgmr.msrb.gmra.mxu1 %vm668_vm3, %v3760_v5 }
 0x2f3   : > { %3762 = vmatmul.msk.f32.vlgmr.msrb.gmra.mxu2 %vm668_vm3, %v3760_v5  ;;  %3763 = vmatmul.msk.f32.vlgmr.msra.gmra.mxu0 %vm668_vm3, %v3760_v5 }
 0x2f4   : > { %3764 = vmatmul.msk.f32.vlgmr.msra.gmra.mxu3 %vm668_vm3, %v3760_v5 }
 0x31f   : > { %v2665_v48 = vpop.f32.mrf.mxu3 }
 0x327   : > { %v2766_v62 = vpop.f32.mrf.mxu3 }
 0x32f   : > { %v2605_v49 = vpop.f32.mrf.mxu1 }
 0x330   : > { %v2645_v18 = vpop.f32.mrf.mxu0  ;;  %v2668_v8 = vmul.f32 %v2605_v49, %v835_v47 }
 0x331   : > { %v2670_v17 = vmul.f32 %v2645_v18, %v837_v50 }
 0x336   : > { %v2625_v60 = vpop.f32.mrf.mxu2 }
 0x337   : > { %v2706_v29 = vpop.f32.mrf.mxu1 }
 0x338   : > { %v2746_v45 = vpop.f32.mrf.mxu0  ;;  %v2769_v10 = vmul.f32 %v2706_v29, %v1050_v42 }
 0x339   : > { %v2771_v36 = vmul.f32 %v2746_v45, %v1052_v44 }
 0x33a   : > { %v2773_v25 = vadd.f32 %v2769_v10, %v2668_v8  ;;  %v5213_v8 = vperm.slane %v4824_v51, 5 }
 0x33b   : > { %v2775_v29 = vadd.f32 %v2771_v36, %v2670_v17 }
 0x33e   : > { %v2726_v23 = vpop.f32.mrf.mxu2 }
 0x33f   : > { %v2811_v33 = vpop.f32.mrf.mxu1  ;;  %v2770_v44 = vmul.f32 %v2726_v23, %v1051_v54 }
 0x340   : > { %v2851_v19 = vpop.f32.mrf.mxu0  ;;  %v2874_v5 = vmul.f32 %v2811_v33, %v1269_v56  ;;  %v2671_v56 = vmul.f32 %v2665_v48, %v838_v14  ;;  %v5207_v14 = vperm.slane %v4839_v1, 2 }
 0x341   : > { %v2876_v37 = vmul.f32 %v2851_v19, %v1271_v61  ;;  %v2772_v61 = vmul.f32 %v2766_v62, %v1053_v21 }
 0x342   : > { %v2878_v18 = vadd.f32 %v2874_v5, %v2773_v25 }
 0x343   : > { %v2880_v47 = vadd.f32 %v2876_v37, %v2775_v29 }
 0x346   : > { %v2831_v24 = vpop.f32.mrf.mxu2 }
 0x347   : > { %v2871_v38 = vpop.f32.mrf.mxu3  ;;  %v2916_v22 = vpop.f32.mrf.mxu1  ;;  %v2875_v54 = vmul.f32 %v2831_v24, %v1270_v12  ;;  %v2776_v12 = vadd.f32 %v2772_v61, %v2671_v56  ;;  %v5210_v24 = vperm.slane %v4839_v1, 3  ;;  %v5214_v61 = vperm.slane %v4839_v1, 6 }
 0x348   : > { %v2956_v32 = vpop.f32.mrf.mxu0  ;;  %v2979_v42 = vmul.f32 %v2916_v22, %v1488_v35  ;;  %v2877_v48 = vmul.f32 %v2871_v38, %v5207_v14 }
 0x349   : > { %v2981_v50 = vmul.f32 %v2956_v32, %v1490_v43  ;;  %v2669_v43 = vmul.f32 %v2625_v60, %v836_v0  ;;  %v5209_v0 = vperm.slane %v4815_v40, 6 }
 0x34a   : > { %v2983_v33 = vadd.f32 %v2979_v42, %v2878_v18  ;;  %v2881_v17 = vadd.f32 %v2877_v48, %v2776_v12 }
 0x34b   : > { %v2985_v25 = vadd.f32 %v2981_v50, %v2880_v47  ;;  %v2774_v62 = vadd.f32 %v2770_v44, %v2669_v43  ;;  %v620_v43 = vpop.permute.xlu1 %619 }
 0x34e   : > { %v2936_v30 = vpop.f32.mrf.mxu2 }
 0x34f   : > { %v2976_v53 = vpop.f32.mrf.mxu3  ;;  %v3009_v6 = vpop.f32.mrf.mxu1 }
 0x350   : > { %v3049_v41 = vpop.f32.mrf.mxu0  ;;  %v3072_v23 = vadd.f32 %v3009_v6, %v2983_v33  ;;  %v2879_v6 = vadd.f32 %v2875_v54, %v2774_v62 }
 0x351   : > { %v3074_v32 = vadd.f32 %v3049_v41, %v2985_v25  ;;  %v5216_v25 = vperm.slane %v4839_v1, 7 }
 0x356   : > { %v3029_v55 = vpop.f32.mrf.mxu2 }
 0x357   : > { %v5110_v7 = vpop.f32.mrf.mxu3  ;;  %v3110_v34 = vpop.f32.mrf.mxu1 }
 0x358   : > { %v3150_v28 = vpop.f32.mrf.mxu0  ;;  %v3173_v35 = vmul.f32 %v3110_v34, %v1881_v13  ;;  %v5208_v13 = vperm.slane %v4824_v51, 3  ;;  %v2982_v34 = vmul.f32 %v2976_v53, %v5210_v24 }
 0x359   : > { %v3175_v37 = vmul.f32 %v3150_v28, %v1883_v16  ;;  %v5211_v28 = vperm.slane %v4810_v39, 7 }
 0x35a   : > { %v2980_v22 = vmul.f32 %v2936_v30, %v5208_v13  ;;  %v3177_v16 = vadd.f32 %v3173_v35, %v3072_v23  ;;  %v2986_v53 = vadd.f32 %v2982_v34, %v2881_v17 }
 0x35b   : > { %v3179_v10 = vadd.f32 %v3175_v37, %v3074_v32 }
 0x35c   : > { %v2984_v41 = vadd.f32 %v2980_v22, %v2879_v6 }
 0x35e   : > { %v3130_v15 = vpop.f32.mrf.mxu2 }
 0x35f   : > { %v3170_v31 = vpop.f32.mrf.mxu3  ;;  %v3215_v63 = vpop.f32.mrf.mxu1 }
 0x360   : > { %v3255_v59 = vpop.f32.mrf.mxu0  ;;  %v3278_v21 = vmul.f32 %v3215_v63, %v2100_v20  ;;  %v5212_v20 = vperm.slane %v4815_v40, 7  ;;  %v3176_v39 = vmul.f32 %v3170_v31, %v1884_v46  ;;  %v3073_v40 = vadd.f32 %v3029_v55, %v2984_v41 }
 0x361   : > { %v3280_v60 = vmul.f32 %v3255_v59, %v5209_v0  ;;  %v3174_v59 = vmul.f32 %v3130_v15, %v5213_v8  ;;  %v3075_v15 = vadd.f32 %v5110_v7, %v2986_v53  ;;  %v5215_v31 = vperm.slane %v4824_v51, 7 }
 0x362   : > { %v3282_v36 = vadd.f32 %v3278_v21, %v3177_v16  ;;  %v622_v7 = vadd.f32 %v620_v43, %v4757_v57  ;;  %v624_v57 = vadd.f32 %v620_v43, %v4759_v58  ;;  %v625_v58 = vadd.f32 %v620_v43, %v4766_v2 }
 0x363   : > { %v3284_v5 = vadd.f32 %v3280_v60, %v3179_v10  ;;  %v3178_v46 = vadd.f32 %v3174_v59, %v3073_v40  ;;  %v3180_v55 = vadd.f32 %v3176_v39, %v3075_v15 }
 0x366   : > { %v3235_v26 = vpop.f32.mrf.mxu2 }
 0x367   : > { %v3275_v49 = vpop.f32.mrf.mxu3  ;;  %v3320_v45 = vpop.f32.mrf.mxu1  ;;  %v3279_v47 = vmul.f32 %v3235_v26, %v2101_v3 }
 0x368   : > { %v3360_v19 = vpop.f32.mrf.mxu0  ;;  %v3383_v38 = vmul.f32 %v3320_v45, %v5211_v28  ;;  %v3281_v33 = vmul.f32 %v3275_v49, %v5214_v61 }
 0x369   : > { %v3385_v63 = vmul.f32 %v3360_v19, %v5212_v20  ;;  %v3499_v19 = vpop.permute.xlu0 %3498  ;;  %v3283_v37 = vadd.f32 %v3279_v47, %v3178_v46 }
 0x36a   : > { %v3387_v50 = vadd.f32 %v3383_v38, %v3282_v36  ;;  %v3285_v14 = vadd.f32 %v3281_v33, %v3180_v55 }
 0x36b   : > { %v3389_v45 = vadd.f32 %v3385_v63, %v3284_v5 }
 0x36e   : > { %v3340_v30 = vpop.f32.mrf.mxu2 }
 0x36f   : > { %v3380_v42 = vpop.f32.mrf.mxu3  ;;  %v3425_v29 = vpop.f32.mrf.mxu1 }
 0x370   : > { %v3488_v18 = vmul.f32 %v4902_v9, %v3425_v29  ;;  %v3465_v44 = vpop.f32.mrf.mxu0  ;;  %v3384_v9 = vmul.f32 %v3340_v30, %v5215_v31  ;;  %v3386_v3 = vmul.f32 %v3380_v42, %v5216_v25 }
 0x371   : > { %v3490_v56 = vmul.f32 %v4912_v52, %v3465_v44 }
 0x372   : > { %v3492_v35 = vadd.f32 %v3488_v18, %v3387_v50  ;;  %v3388_v23 = vadd.f32 %v3384_v9, %v3283_v37  ;;  %v3390_v13 = vadd.f32 %v3386_v3, %v3285_v14 }
 0x373   : > { %v3494_v54 = vadd.f32 %v3490_v56, %v3389_v45 }
 0x374   : > { %v3501_v26 = vadd.f32 %v3499_v19, %v3492_v35 }
 0x375   : > { %v3503_v52 = vadd.f32 %v3499_v19, %v3494_v54 }
 0x376   : > { %vm3505_vm15 = vcmp.ge.f32.partialorder %v3501_v26, 0.0  ;;  %v3509_v49 = vmul.f32 0.01, %v3501_v26  ;;  %v3445_v48 = vpop.f32.mrf.mxu2 }
 0x377   : > { %vm3507_vm0 = vcmp.ge.f32.partialorder %v3503_v52, 0.0  ;;  %v3511_v21 = vmul.f32 0.01, %v3503_v52  ;;  %v3489_v51 = vmul.f32 %v4929_v11, %v3445_v48  ;;  %v3485_v62 = vpop.f32.mrf.mxu3 }
 0x378   : > { %v3513_v22 = vsel %vm3505_vm15, %v3501_v26, %v3509_v49  ;;  %v3491_v1 = vmul.f32 %v4937_v27, %v3485_v62  ;;  %v623_v27 = vadd.f32 %v620_v43, %v4768_v4 }
 0x379   : > { %v3517_v32 = vadd.f32 %v3513_v22, %v622_v7  ;;  %v3493_v0 = vadd.f32 %v3489_v51, %v3388_v23  ;;  %v3515_v60 = vsel %vm3507_vm0, %v3503_v52, %v3511_v21 }
 0x37a   : > { %v3495_v12 = vadd.f32 %v3491_v1, %v3390_v13  ;;  %v3519_v28 = vadd.f32 %v3515_v60, %v624_v57 }
 0x37b   : > { %vm3521_vm1 = vcmp.ge.f32.partialorder %v3517_v32, 0.0  ;;  %v3525_v24 = vmul.f32 0.01, %v3517_v32  ;;  %v3502_v34 = vadd.f32 %v3499_v19, %v3493_v0 }
 0x37c   : > { %v3504_v11 = vadd.f32 %v3499_v19, %v3495_v12  ;;  %v3527_v17 = vmul.f32 0.01, %v3519_v28  ;;  %vm3523_vm4 = vcmp.ge.f32.partialorder %v3519_v28, 0.0 }
 0x37d   : > { %v3529_v16 = vsel %vm3521_vm1, %v3517_v32, %v3525_v24  ;;  %vm3506_vm2 = vcmp.ge.f32.partialorder %v3502_v34, 0.0  ;;  %v3510_v38 = vmul.f32 0.01, %v3502_v34 }
 0x37e   : > { %3533 = vst [vmem:[%s413_s18] sm:$0xff] %v3529_v16  ;;  %vm3508_vm3 = vcmp.ge.f32.partialorder %v3504_v11, 0.0  ;;  %v3512_v6 = vmul.f32 0.01, %v3504_v11  ;;  %v3531_v59 = vsel %vm3523_vm4, %v3519_v28, %v3527_v17 }
 0x37f   : > { %v3514_v10 = vsel %vm3506_vm2, %v3502_v34, %v3510_v38  ;;  %3535 = vst [vmem:[%s413_s18 + $0x10] sm:$0xff] %v3531_v59 }
 0x380   : > { %v3518_v20 = vadd.f32 %v3514_v10, %v623_v27  ;;  %v3516_v63 = vsel %vm3508_vm3, %v3504_v11, %v3512_v6 }
 0x381   : > { %v3520_v36 = vadd.f32 %v3516_v63, %v625_v58 }
 0x382   : > { %vm3522_vm5 = vcmp.ge.f32.partialorder %v3518_v20, 0.0  ;;  %v3526_v30 = vmul.f32 0.01, %v3518_v20 }
 0x383   : > { %vm3524_vm6 = vcmp.ge.f32.partialorder %v3520_v36, 0.0  ;;  %v3528_v41 = vmul.f32 0.01, %v3520_v36 }
 0x384   : > { %v3530_v8 = vsel %vm3522_vm5, %v3518_v20, %v3526_v30 }
 0x385   : > { %3534 = vst [vmem:[%s413_s18 + $0x8] sm:$0xff] %v3530_v8  ;;  %v3532_v4 = vsel %vm3524_vm6, %v3520_v36, %v3528_v41 }
 0x386   : > { %3536 = vst [vmem:[%s413_s18 + $0x18] sm:$0xff] %v3532_v4 }
 0x387 PF: > { %s21_s17 = sadd.s32 1, %s4117_s17  }
 0x388   : > { %p18_p5 = scmp.ge.s32.totalorder %s21_s17, 4  }
 0x38a   :  { %20 = sbr.rel (!%p18_p5) target bundleno = 1 (0x1), region = 122 }

</bundles_post_ra>
